<compile_context>
chip_gen: v7x
topology: tpu7x:2x2x1
jax: 0.10.0
libtpu: 0.0.40
codegen_flags: <defaults>
</compile_context>

<pallas_src>
import functools

import jax
import jax.numpy as jnp
import numpy as np
from jax.experimental import pallas as pl
from jax.experimental.pallas import tpu as pltpu

# ----------------------------- configuration (small, consistent with the module) ---------------
B = 2                       # batch
INPUT = 16                  # input_shape
EM_INPUT = 8                # em_input_shape
HIDDEN_SHAPES = (32, 32)    # hidden_shapes      -> base.output_shape = 32
EM_HIDDEN_SHAPES = (32, 32) # em_hidden_shapes   -> em_base.output_shape = 32
NUM_LAYERS = 3              # num_layers
NUM_MODULES = 4             # num_modules
MODULE_HIDDEN = 32          # module_hidden
GATING_HIDDEN = 32          # gating_hidden
NUM_GATING_LAYERS = 2       # num_gating_layers
OUTPUT_SHAPE = 6            # output_shape


# ----------------------------------- fused kernel ----------------------------------------------
def _fused_kernel(*refs, nb, ne, ng, ncasc, nlayers, num_modules, module_hidden):
    M = num_modules
    H = module_hidden
    MM = M * M

    pos = [0]

    def take(n):
        r = refs[pos[0]:pos[0] + n]
        pos[0] += n
        return r

    x_ref, emb_ref = take(2)
    base_refs = take(2 * nb)
    em_refs = take(2 * ne)
    gat_refs = take(2 * ng)
    gw0_w, gw0_b = take(2)
    casc_refs = take(4 * ncasc)                  # (cond_w, cond_b, w_w, w_b) per cascade step
    cwl, cbl, wwl, wbl = take(4)                 # gating_weight_cond_last, gating_weight_last
    (gmat_ref,) = take(1)                        # (MM, MM) group-indicator matrix
    m0w, m0b = take(2)                           # packed first module layer (in, M*H), (1, M*H)
    bd_refs = take(2 * (nlayers - 1))            # block-diagonal module layers
    lw_ref, lb_ref = take(2)                     # last linear
    (o_ref,) = take(1)
    cond_scr, mix_scr = take(2)                  # VMEM scratch
    assert pos[0] == len(refs)

    relu = lambda v: jnp.maximum(v, 0.0)

    def linear(h, w_ref, b_ref):
        return jnp.dot(h, w_ref[...], preferred_element_type=jnp.float32) + b_ref[...]

    # ---- base / em_base MLPs (last layer: null activation) ----
    h = x_ref[...]
    for i in range(nb):
        h = linear(h, base_refs[2 * i], base_refs[2 * i + 1])
        if i < nb - 1:
            h = relu(h)
    e = emb_ref[...]
    for i in range(ne):
        e = linear(e, em_refs[2 * i], em_refs[2 * i + 1])
        if i < ne - 1:
            e = relu(e)

    # ---- cond_ob: embedding = em_out * base_out ; out = relu(base_out) ----
    embedding = e * h
    out = relu(h)

    # ---- gating fcs ----
    if ng > 0:
        embedding = relu(embedding)
        for i in range(ng):
            embedding = linear(embedding, gat_refs[2 * i], gat_refs[2 * i + 1])
            if i < ng - 1:
                embedding = relu(embedding)

    # ---- grouped softmax over M-lane groups of a (B, M*M) row (via group-sum matmul) ----
    gmat = gmat_ref[...]

    def grouped_softmax(raw):
        mx = jnp.max(raw, axis=-1, keepdims=True)        # global row max (valid per-group shift)
        ex = jnp.exp(raw - mx)
        gsum = jnp.dot(ex, gmat, preferred_element_type=jnp.float32)
        return ex / gsum

    # ---- gating weight cascade (pre_softmax = False) ----
    sm_list = []
    raw = linear(relu(embedding), gw0_w, gw0_b)          # (B, M*M)
    sm = grouped_softmax(raw)
    sm_list.append(sm)
    cond_scr[:, 0:MM] = sm

    for c in range(ncasc):
        cw, cb, ww, wb = casc_refs[4 * c:4 * c + 4]
        cond = cond_scr[:, 0:(c + 1) * MM]
        cond = relu(linear(cond, cw, cb) * embedding)
        raw = linear(cond, ww, wb)
        sm = grouped_softmax(raw)
        sm_list.append(sm)
        cond_scr[:, (c + 1) * MM:(c + 2) * MM] = sm

    cond = cond_scr[:, 0:(ncasc + 1) * MM]
    cond = relu(linear(cond, cwl, cbl) * embedding)
    raw_last = linear(cond, wwl, wbl)                    # (B, M)
    mx = jnp.max(raw_last, axis=-1, keepdims=True)
    ex = jnp.exp(raw_last - mx)
    last_weight = ex / jnp.sum(ex, axis=-1, keepdims=True)

    # ---- module cascade: activations kept as flat lane-dense (B, M*H) ----
    mo = linear(out, m0w, m0b)                           # (B, M*H) -- one lane-dense matmul
    for i in range(nlayers - 1):
        w_flat = sm_list[i]                              # (B, M*M), [b, j*M+m] = weights[i][b,j,m]
        for j in range(M):
            acc = w_flat[:, j * M:j * M + 1] * mo[:, 0:H]
            for m in range(1, M):
                acc = acc + w_flat[:, j * M + m:j * M + m + 1] * mo[:, m * H:(m + 1) * H]
            mix_scr[:, j * H:(j + 1) * H] = acc
        mixed = relu(mix_scr[...])
        # one 128x128 block-diagonal matmul == per-module linears
        mo = linear(mixed, bd_refs[2 * i], bd_refs[2 * i + 1])

    # ---- final mix + head ----
    fin = last_weight[:, 0:1] * mo[:, 0:H]
    for m in range(1, M):
        fin = fin + last_weight[:, m:m + 1] * mo[:, m * H:(m + 1) * H]
    o_ref[...] = linear(relu(fin), lw_ref, lb_ref)


# ----------------------------------- forward wrapper --------------------------------------------
def forward(params, x, emb_in):
    M, H = NUM_MODULES, MODULE_HIDDEN
    MM = M * M
    Bsz = x.shape[0]

    args = [x, emb_in]
    for w, b in params["base"]:
        args += [w, b]
    for w, b in params["em_base"]:
        args += [w, b]
    for w, b in params["gating_fcs"]:
        args += [w, b]
    args += list(params["gw_fc0"])
    for (ww, wb), (cw, cb) in zip(params["gw_fcs"], params["gw_cond_fcs"]):
        args += [cw, cb, ww, wb]
    args += list(params["gw_cond_last"])
    args += list(params["gw_last"])

    # group-indicator matrix for the grouped softmax
    lane = jnp.arange(MM)
    gmat = ((lane[:, None] // M) == (lane[None, :] // M)).astype(jnp.float32)
    args.append(gmat)

    # first module layer packed lane-dense: (in, M*H), (1, M*H)
    fw0, fb0 = params["modules"][0]                       # (M, in, H), (M, 1, H)
    args.append(jnp.transpose(fw0, (1, 0, 2)).reshape(fw0.shape[1], M * H))
    args.append(fb0.reshape(1, M * H))

    # subsequent module layers packed block-diagonal: (M*H, M*H), (1, M*H)
    eye = jnp.eye(M, dtype=jnp.float32)
    for i in range(1, NUM_LAYERS):
        fw, fb = params["modules"][i]                     # (M, H, H), (M, 1, H)
        wbd = jnp.einsum("mab,mj->majb", fw, eye).reshape(M * H, M * H)
        args += [wbd, fb.reshape(1, M * H)]

    args += list(params["last"])

    kernel = functools.partial(
        _fused_kernel,
        nb=len(params["base"]),
        ne=len(params["em_base"]),
        ng=len(params["gating_fcs"]),
        ncasc=len(params["gw_fcs"]),
        nlayers=NUM_LAYERS,
        num_modules=M,
        module_hidden=H,
    )

    return pl.pallas_call(
        kernel,
        out_shape=jax.ShapeDtypeStruct((Bsz, OUTPUT_SHAPE), jnp.float32),
        scratch_shapes=[
            pltpu.VMEM((Bsz, (NUM_LAYERS - 1) * MM), jnp.float32),  # flattened gating weights
            pltpu.VMEM((Bsz, M * H), jnp.float32),                  # mixed module inputs
        ],
    )(*args)


# ----------------------------------- parameters ------------------------------------------------
def init_params(key):
    keys = iter(jax.random.split(key, 64))

    def lin(fan_in, fan_out, scale=0.1):
        kw, kb = jax.random.split(next(keys))
        w = (jax.random.normal(kw, (fan_in, fan_out)) * scale).astype(jnp.float32)
        b = (jax.random.normal(kb, (1, fan_out)) * scale).astype(jnp.float32)
        return w, b

    params = {}
    # base MLP  (last activation = null_activation)
    base, d = [], INPUT
    for h in HIDDEN_SHAPES:
        base.append(lin(d, h)); d = h
    params["base"] = base
    # embedding MLP
    em, d = [], EM_INPUT
    for h in EM_HIDDEN_SHAPES:
        em.append(lin(d, h)); d = h
    params["em_base"] = em
    # gating fcs
    gdim = EM_HIDDEN_SHAPES[-1]
    gfcs = []
    for _ in range(NUM_GATING_LAYERS):
        gfcs.append(lin(gdim, GATING_HIDDEN)); gdim = GATING_HIDDEN
    params["gating_fcs"] = gfcs
    # gating weight fcs
    M2 = NUM_MODULES * NUM_MODULES
    params["gw_fc0"] = lin(gdim, M2)
    cond_fcs, w_fcs = [], []
    for layer_idx in range(NUM_LAYERS - 2):
        cond_fcs.append(lin((layer_idx + 1) * M2, gdim))
        w_fcs.append(lin(gdim, M2))
    params["gw_cond_fcs"] = cond_fcs
    params["gw_fcs"] = w_fcs
    params["gw_cond_last"] = lin((NUM_LAYERS - 1) * M2, gdim)
    params["gw_last"] = lin(gdim, NUM_MODULES)
    # layer modules (stacked per layer: (M, in, out), (M, 1, out))
    modules, md = [], HIDDEN_SHAPES[-1]
    for _ in range(NUM_LAYERS):
        ws, bs = [], []
        for _ in range(NUM_MODULES):
            w, b = lin(md, MODULE_HIDDEN)
            ws.append(w); bs.append(b)
        modules.append((jnp.stack(ws), jnp.stack(bs)))
        md = MODULE_HIDDEN
    params["modules"] = modules
    params["last"] = lin(MODULE_HIDDEN, OUTPUT_SHAPE)
    return params


# ----------------------------------- pure-JAX reference ----------------------------------------
def reference_forward(params, x, emb_in):
    relu = lambda v: jnp.maximum(v, 0.0)
    M = NUM_MODULES
    Bsz = x.shape[0]

    def softmax(z):
        z = z - jnp.max(z, axis=-1, keepdims=True)
        ez = jnp.exp(z)
        return ez / jnp.sum(ez, axis=-1, keepdims=True)

    h = x
    nb = len(params["base"])
    for i, (w, b) in enumerate(params["base"]):
        h = h @ w + b
        if i < nb - 1:
            h = relu(h)
    e = emb_in
    ne = len(params["em_base"])
    for i, (w, b) in enumerate(params["em_base"]):
        e = e @ w + b
        if i < ne - 1:
            e = relu(e)
    embedding = e * h
    out = relu(h)
    gfcs = params["gating_fcs"]
    if gfcs:
        embedding = relu(embedding)
        for (w, b) in gfcs[:-1]:
            embedding = relu(embedding @ w + b)
        w, b = gfcs[-1]
        embedding = embedding @ w + b
    w0, b0 = params["gw_fc0"]
    raw = relu(embedding) @ w0 + b0
    sm = softmax(raw.reshape(Bsz, M, M))
    weights_list = [sm]
    flat = [sm.reshape(Bsz, M * M)]
    for (ww, wb), (cw, cb) in zip(params["gw_fcs"], params["gw_cond_fcs"]):
        cond = jnp.concatenate(flat, axis=-1)
        cond = relu((cond @ cw + cb) * embedding)
        raw = cond @ ww + wb
        sm = softmax(raw.reshape(Bsz, M, M))
        weights_list.append(sm)
        flat.append(sm.reshape(Bsz, M * M))
    cond = jnp.concatenate(flat, axis=-1)
    cw, cb = params["gw_cond_last"]
    cond = relu((cond @ cw + cb) * embedding)
    ww, wb = params["gw_last"]
    last_weight = softmax(cond @ ww + wb)

    fw0, fb0 = params["modules"][0]
    mo = jnp.stack([out @ fw0[j] + fb0[j] for j in range(M)], axis=1)
    for i in range(NUM_LAYERS - 1):
        fw, fb = params["modules"][i + 1]
        new = []
        for j in range(M):
            mi = relu(jnp.sum(mo * weights_list[i][:, j, :][:, :, None], axis=1))
            new.append(mi @ fw[j] + fb[j])
        mo = jnp.stack(new, axis=1)
    lw, lb = params["last"]
    mixed = relu(jnp.sum(mo * last_weight[:, :, None], axis=1))
    return mixed @ lw + lb


# ----------------------------------- main -------------------------------------------------------
if __name__ == "__main__":
    key = jax.random.PRNGKey(0)
    kx, ke, kp = jax.random.split(key, 3)
    x = jax.random.normal(kx, (B, INPUT), jnp.float32)
    embedding_input = jax.random.normal(ke, (B, EM_INPUT), jnp.float32)
    params = init_params(kp)

    out = jax.jit(forward)(params, x, embedding_input)
    out = jax.block_until_ready(out)
    assert out.shape == (B, OUTPUT_SHAPE)

    ref = reference_forward(params, x, embedding_input)
    np.testing.assert_allclose(np.asarray(out), np.asarray(ref), rtol=1e-3, atol=1e-3)

    print("KERNEL_OK")
</pallas_src>

<mosaic_0001>
module attributes {stable_mosaic.version = 11 : i64} {
  func.func @_fused_kernel(%arg0: memref<2x16xf32, #tpu.memory_space<vmem>>, %arg1: memref<2x8xf32, #tpu.memory_space<vmem>>, %arg2: memref<16x32xf32, #tpu.memory_space<vmem>>, %arg3: memref<1x32xf32, #tpu.memory_space<vmem>>, %arg4: memref<32x32xf32, #tpu.memory_space<vmem>>, %arg5: memref<1x32xf32, #tpu.memory_space<vmem>>, %arg6: memref<8x32xf32, #tpu.memory_space<vmem>>, %arg7: memref<1x32xf32, #tpu.memory_space<vmem>>, %arg8: memref<32x32xf32, #tpu.memory_space<vmem>>, %arg9: memref<1x32xf32, #tpu.memory_space<vmem>>, %arg10: memref<32x32xf32, #tpu.memory_space<vmem>>, %arg11: memref<1x32xf32, #tpu.memory_space<vmem>>, %arg12: memref<32x32xf32, #tpu.memory_space<vmem>>, %arg13: memref<1x32xf32, #tpu.memory_space<vmem>>, %arg14: memref<32x16xf32, #tpu.memory_space<vmem>>, %arg15: memref<1x16xf32, #tpu.memory_space<vmem>>, %arg16: memref<16x32xf32, #tpu.memory_space<vmem>>, %arg17: memref<1x32xf32, #tpu.memory_space<vmem>>, %arg18: memref<32x16xf32, #tpu.memory_space<vmem>>, %arg19: memref<1x16xf32, #tpu.memory_space<vmem>>, %arg20: memref<32x32xf32, #tpu.memory_space<vmem>>, %arg21: memref<1x32xf32, #tpu.memory_space<vmem>>, %arg22: memref<32x4xf32, #tpu.memory_space<vmem>>, %arg23: memref<1x4xf32, #tpu.memory_space<vmem>>, %arg24: memref<16x16xf32, #tpu.memory_space<vmem>>, %arg25: memref<32x128xf32, #tpu.memory_space<vmem>>, %arg26: memref<1x128xf32, #tpu.memory_space<vmem>>, %arg27: memref<128x128xf32, #tpu.memory_space<vmem>>, %arg28: memref<1x128xf32, #tpu.memory_space<vmem>>, %arg29: memref<128x128xf32, #tpu.memory_space<vmem>>, %arg30: memref<1x128xf32, #tpu.memory_space<vmem>>, %arg31: memref<32x6xf32, #tpu.memory_space<vmem>>, %arg32: memref<1x6xf32, #tpu.memory_space<vmem>>, %arg33: memref<2x6xf32, #tpu.memory_space<vmem>>, %arg34: memref<2x32xf32, #tpu.memory_space<vmem>>, %arg35: memref<2x128xf32, #tpu.memory_space<vmem>>) attributes {dimension_semantics = [], scalar_prefetch = 0 : i64, scratch_operands = 2 : i64, tpu.core_type = #tpu.core_type<tc>} {
    %c0 = arith.constant 0 : index
    %c0_0 = arith.constant 0 : index
    %0 = vector.load %arg0[%c0, %c0_0] : memref<2x16xf32, #tpu.memory_space<vmem>>, vector<2x16xf32>
    %c0_1 = arith.constant 0 : index
    %c0_2 = arith.constant 0 : index
    %1 = vector.load %arg2[%c0_1, %c0_2] : memref<16x32xf32, #tpu.memory_space<vmem>>, vector<16x32xf32>
    %cst = arith.constant dense<0.000000e+00> : vector<2x32xf32>
    %2 = tpu.matmul %0, %1, %cst {dimension_numbers = #tpu.dot_dimension_numbers<[1], [0], [0], [1], [0, 0, 1, 1], [], []>} : vector<2x16xf32>, vector<16x32xf32>, vector<2x32xf32> -> vector<2x32xf32>
    %c0_3 = arith.constant 0 : index
    %c0_4 = arith.constant 0 : index
    %3 = vector.load %arg3[%c0_3, %c0_4] : memref<1x32xf32, #tpu.memory_space<vmem>>, vector<1x32xf32>
    %4 = vector.broadcast %3 : vector<1x32xf32> to vector<2x32xf32>
    %5 = arith.addf %2, %4 : vector<2x32xf32>
    %cst_5 = arith.constant 0.000000e+00 : f32
    %6 = vector.broadcast %cst_5 : f32 to vector<2x32xf32>
    %7 = arith.maximumf %5, %6 : vector<2x32xf32>
    %c0_6 = arith.constant 0 : index
    %c0_7 = arith.constant 0 : index
    %8 = vector.load %arg4[%c0_6, %c0_7] : memref<32x32xf32, #tpu.memory_space<vmem>>, vector<32x32xf32>
    %cst_8 = arith.constant dense<0.000000e+00> : vector<2x32xf32>
    %9 = tpu.matmul %7, %8, %cst_8 {dimension_numbers = #tpu.dot_dimension_numbers<[1], [0], [0], [1], [0, 0, 1, 1], [], []>} : vector<2x32xf32>, vector<32x32xf32>, vector<2x32xf32> -> vector<2x32xf32>
    %c0_9 = arith.constant 0 : index
    %c0_10 = arith.constant 0 : index
    %10 = vector.load %arg5[%c0_9, %c0_10] : memref<1x32xf32, #tpu.memory_space<vmem>>, vector<1x32xf32>
    %11 = vector.broadcast %10 : vector<1x32xf32> to vector<2x32xf32>
    %12 = arith.addf %9, %11 : vector<2x32xf32>
    %c0_11 = arith.constant 0 : index
    %c0_12 = arith.constant 0 : index
    %13 = vector.load %arg1[%c0_11, %c0_12] : memref<2x8xf32, #tpu.memory_space<vmem>>, vector<2x8xf32>
    %c0_13 = arith.constant 0 : index
    %c0_14 = arith.constant 0 : index
    %14 = vector.load %arg6[%c0_13, %c0_14] : memref<8x32xf32, #tpu.memory_space<vmem>>, vector<8x32xf32>
    %cst_15 = arith.constant dense<0.000000e+00> : vector<2x32xf32>
    %15 = tpu.matmul %13, %14, %cst_15 {dimension_numbers = #tpu.dot_dimension_numbers<[1], [0], [0], [1], [0, 0, 1, 1], [], []>} : vector<2x8xf32>, vector<8x32xf32>, vector<2x32xf32> -> vector<2x32xf32>
    %c0_16 = arith.constant 0 : index
    %c0_17 = arith.constant 0 : index
    %16 = vector.load %arg7[%c0_16, %c0_17] : memref<1x32xf32, #tpu.memory_space<vmem>>, vector<1x32xf32>
    %17 = vector.broadcast %16 : vector<1x32xf32> to vector<2x32xf32>
    %18 = arith.addf %15, %17 : vector<2x32xf32>
    %cst_18 = arith.constant 0.000000e+00 : f32
    %19 = vector.broadcast %cst_18 : f32 to vector<2x32xf32>
    %20 = arith.maximumf %18, %19 : vector<2x32xf32>
    %c0_19 = arith.constant 0 : index
    %c0_20 = arith.constant 0 : index
    %21 = vector.load %arg8[%c0_19, %c0_20] : memref<32x32xf32, #tpu.memory_space<vmem>>, vector<32x32xf32>
    %cst_21 = arith.constant dense<0.000000e+00> : vector<2x32xf32>
    %22 = tpu.matmul %20, %21, %cst_21 {dimension_numbers = #tpu.dot_dimension_numbers<[1], [0], [0], [1], [0, 0, 1, 1], [], []>} : vector<2x32xf32>, vector<32x32xf32>, vector<2x32xf32> -> vector<2x32xf32>
    %c0_22 = arith.constant 0 : index
    %c0_23 = arith.constant 0 : index
    %23 = vector.load %arg9[%c0_22, %c0_23] : memref<1x32xf32, #tpu.memory_space<vmem>>, vector<1x32xf32>
    %24 = vector.broadcast %23 : vector<1x32xf32> to vector<2x32xf32>
    %25 = arith.addf %22, %24 : vector<2x32xf32>
    %26 = arith.mulf %25, %12 : vector<2x32xf32>
    %cst_24 = arith.constant 0.000000e+00 : f32
    %27 = vector.broadcast %cst_24 : f32 to vector<2x32xf32>
    %28 = arith.maximumf %12, %27 : vector<2x32xf32>
    %cst_25 = arith.constant 0.000000e+00 : f32
    %29 = vector.broadcast %cst_25 : f32 to vector<2x32xf32>
    %30 = arith.maximumf %26, %29 : vector<2x32xf32>
    %c0_26 = arith.constant 0 : index
    %c0_27 = arith.constant 0 : index
    %31 = vector.load %arg10[%c0_26, %c0_27] : memref<32x32xf32, #tpu.memory_space<vmem>>, vector<32x32xf32>
    %cst_28 = arith.constant dense<0.000000e+00> : vector<2x32xf32>
    %32 = tpu.matmul %30, %31, %cst_28 {dimension_numbers = #tpu.dot_dimension_numbers<[1], [0], [0], [1], [0, 0, 1, 1], [], []>} : vector<2x32xf32>, vector<32x32xf32>, vector<2x32xf32> -> vector<2x32xf32>
    %c0_29 = arith.constant 0 : index
    %c0_30 = arith.constant 0 : index
    %33 = vector.load %arg11[%c0_29, %c0_30] : memref<1x32xf32, #tpu.memory_space<vmem>>, vector<1x32xf32>
    %34 = vector.broadcast %33 : vector<1x32xf32> to vector<2x32xf32>
    %35 = arith.addf %32, %34 : vector<2x32xf32>
    %cst_31 = arith.constant 0.000000e+00 : f32
    %36 = vector.broadcast %cst_31 : f32 to vector<2x32xf32>
    %37 = arith.maximumf %35, %36 : vector<2x32xf32>
    %c0_32 = arith.constant 0 : index
    %c0_33 = arith.constant 0 : index
    %38 = vector.load %arg12[%c0_32, %c0_33] : memref<32x32xf32, #tpu.memory_space<vmem>>, vector<32x32xf32>
    %cst_34 = arith.constant dense<0.000000e+00> : vector<2x32xf32>
    %39 = tpu.matmul %37, %38, %cst_34 {dimension_numbers = #tpu.dot_dimension_numbers<[1], [0], [0], [1], [0, 0, 1, 1], [], []>} : vector<2x32xf32>, vector<32x32xf32>, vector<2x32xf32> -> vector<2x32xf32>
    %c0_35 = arith.constant 0 : index
    %c0_36 = arith.constant 0 : index
    %40 = vector.load %arg13[%c0_35, %c0_36] : memref<1x32xf32, #tpu.memory_space<vmem>>, vector<1x32xf32>
    %41 = vector.broadcast %40 : vector<1x32xf32> to vector<2x32xf32>
    %42 = arith.addf %39, %41 : vector<2x32xf32>
    %c0_37 = arith.constant 0 : index
    %c0_38 = arith.constant 0 : index
    %43 = vector.load %arg24[%c0_37, %c0_38] : memref<16x16xf32, #tpu.memory_space<vmem>>, vector<16x16xf32>
    %cst_39 = arith.constant 0.000000e+00 : f32
    %44 = vector.broadcast %cst_39 : f32 to vector<2x32xf32>
    %45 = arith.maximumf %42, %44 : vector<2x32xf32>
    %c0_40 = arith.constant 0 : index
    %c0_41 = arith.constant 0 : index
    %46 = vector.load %arg14[%c0_40, %c0_41] : memref<32x16xf32, #tpu.memory_space<vmem>>, vector<32x16xf32>
    %cst_42 = arith.constant dense<0.000000e+00> : vector<2x16xf32>
    %47 = tpu.matmul %45, %46, %cst_42 {dimension_numbers = #tpu.dot_dimension_numbers<[1], [0], [0], [1], [0, 0, 1, 1], [], []>} : vector<2x32xf32>, vector<32x16xf32>, vector<2x16xf32> -> vector<2x16xf32>
    %c0_43 = arith.constant 0 : index
    %c0_44 = arith.constant 0 : index
    %48 = vector.load %arg15[%c0_43, %c0_44] : memref<1x16xf32, #tpu.memory_space<vmem>>, vector<1x16xf32>
    %49 = vector.broadcast %48 : vector<1x16xf32> to vector<2x16xf32>
    %50 = arith.addf %47, %49 : vector<2x16xf32>
    %cst_45 = arith.constant dense<0xFF800000> : vector<2xf32>
    %51 = vector.multi_reduction <maximumf>, %50, %cst_45 [1] : vector<2x16xf32> to vector<2xf32>
    %52 = vector.shape_cast %51 : vector<2xf32> to vector<2x1xf32>
    %53 = vector.broadcast %52 : vector<2x1xf32> to vector<2x16xf32>
    %54 = arith.subf %50, %53 : vector<2x16xf32>
    %55 = math.exp %54 : vector<2x16xf32>
    %cst_46 = arith.constant dense<0.000000e+00> : vector<2x16xf32>
    %56 = tpu.matmul %55, %43, %cst_46 {dimension_numbers = #tpu.dot_dimension_numbers<[1], [0], [0], [1], [0, 0, 1, 1], [], []>} : vector<2x16xf32>, vector<16x16xf32>, vector<2x16xf32> -> vector<2x16xf32>
    %57 = arith.divf %55, %56 : vector<2x16xf32>
    %c0_47 = arith.constant 0 : index
    %c0_48 = arith.constant 0 : index
    %58 = vector.load %arg34[%c0_47, %c0_48] : memref<2x32xf32, #tpu.memory_space<vmem>>, vector<2x16xf32>
    tpu.vector_store %arg34[%c0_47, %c0_48], %57 {strides = array<i32>} : memref<2x32xf32, #tpu.memory_space<vmem>>, vector<2x16xf32>,
    %c0_49 = arith.constant 0 : index
    %c0_50 = arith.constant 0 : index
    %59 = vector.load %arg34[%c0_49, %c0_50] : memref<2x32xf32, #tpu.memory_space<vmem>>, vector<2x16xf32>
    %c0_51 = arith.constant 0 : index
    %c0_52 = arith.constant 0 : index
    %60 = vector.load %arg16[%c0_51, %c0_52] : memref<16x32xf32, #tpu.memory_space<vmem>>, vector<16x32xf32>
    %cst_53 = arith.constant dense<0.000000e+00> : vector<2x32xf32>
    %61 = tpu.matmul %59, %60, %cst_53 {dimension_numbers = #tpu.dot_dimension_numbers<[1], [0], [0], [1], [0, 0, 1, 1], [], []>} : vector<2x16xf32>, vector<16x32xf32>, vector<2x32xf32> -> vector<2x32xf32>
    %c0_54 = arith.constant 0 : index
    %c0_55 = arith.constant 0 : index
    %62 = vector.load %arg17[%c0_54, %c0_55] : memref<1x32xf32, #tpu.memory_space<vmem>>, vector<1x32xf32>
    %63 = vector.broadcast %62 : vector<1x32xf32> to vector<2x32xf32>
    %64 = arith.addf %61, %63 : vector<2x32xf32>
    %65 = arith.mulf %64, %42 : vector<2x32xf32>
    %cst_56 = arith.constant 0.000000e+00 : f32
    %66 = vector.broadcast %cst_56 : f32 to vector<2x32xf32>
    %67 = arith.maximumf %65, %66 : vector<2x32xf32>
    %c0_57 = arith.constant 0 : index
    %c0_58 = arith.constant 0 : index
    %68 = vector.load %arg18[%c0_57, %c0_58] : memref<32x16xf32, #tpu.memory_space<vmem>>, vector<32x16xf32>
    %cst_59 = arith.constant dense<0.000000e+00> : vector<2x16xf32>
    %69 = tpu.matmul %67, %68, %cst_59 {dimension_numbers = #tpu.dot_dimension_numbers<[1], [0], [0], [1], [0, 0, 1, 1], [], []>} : vector<2x32xf32>, vector<32x16xf32>, vector<2x16xf32> -> vector<2x16xf32>
    %c0_60 = arith.constant 0 : index
    %c0_61 = arith.constant 0 : index
    %70 = vector.load %arg19[%c0_60, %c0_61] : memref<1x16xf32, #tpu.memory_space<vmem>>, vector<1x16xf32>
    %71 = vector.broadcast %70 : vector<1x16xf32> to vector<2x16xf32>
    %72 = arith.addf %69, %71 : vector<2x16xf32>
    %cst_62 = arith.constant dense<0xFF800000> : vector<2xf32>
    %73 = vector.multi_reduction <maximumf>, %72, %cst_62 [1] : vector<2x16xf32> to vector<2xf32>
    %74 = vector.shape_cast %73 : vector<2xf32> to vector<2x1xf32>
    %75 = vector.broadcast %74 : vector<2x1xf32> to vector<2x16xf32>
    %76 = arith.subf %72, %75 : vector<2x16xf32>
    %77 = math.exp %76 : vector<2x16xf32>
    %cst_63 = arith.constant dense<0.000000e+00> : vector<2x16xf32>
    %78 = tpu.matmul %77, %43, %cst_63 {dimension_numbers = #tpu.dot_dimension_numbers<[1], [0], [0], [1], [0, 0, 1, 1], [], []>} : vector<2x16xf32>, vector<16x16xf32>, vector<2x16xf32> -> vector<2x16xf32>
    %79 = arith.divf %77, %78 : vector<2x16xf32>
    %c0_64 = arith.constant 0 : index
    %c16 = arith.constant 16 : index
    %80 = vector.load %arg34[%c0_64, %c16] : memref<2x32xf32, #tpu.memory_space<vmem>>, vector<2x16xf32>
    tpu.vector_store %arg34[%c0_64, %c16], %79 {strides = array<i32>} : memref<2x32xf32, #tpu.memory_space<vmem>>, vector<2x16xf32>,
    %c0_65 = arith.constant 0 : index
    %c0_66 = arith.constant 0 : index
    %81 = vector.load %arg34[%c0_65, %c0_66] : memref<2x32xf32, #tpu.memory_space<vmem>>, vector<2x32xf32>
    %c0_67 = arith.constant 0 : index
    %c0_68 = arith.constant 0 : index
    %82 = vector.load %arg20[%c0_67, %c0_68] : memref<32x32xf32, #tpu.memory_space<vmem>>, vector<32x32xf32>
    %cst_69 = arith.constant dense<0.000000e+00> : vector<2x32xf32>
    %83 = tpu.matmul %81, %82, %cst_69 {dimension_numbers = #tpu.dot_dimension_numbers<[1], [0], [0], [1], [0, 0, 1, 1], [], []>} : vector<2x32xf32>, vector<32x32xf32>, vector<2x32xf32> -> vector<2x32xf32>
    %c0_70 = arith.constant 0 : index
    %c0_71 = arith.constant 0 : index
    %84 = vector.load %arg21[%c0_70, %c0_71] : memref<1x32xf32, #tpu.memory_space<vmem>>, vector<1x32xf32>
    %85 = vector.broadcast %84 : vector<1x32xf32> to vector<2x32xf32>
    %86 = arith.addf %83, %85 : vector<2x32xf32>
    %87 = arith.mulf %86, %42 : vector<2x32xf32>
    %cst_72 = arith.constant 0.000000e+00 : f32
    %88 = vector.broadcast %cst_72 : f32 to vector<2x32xf32>
    %89 = arith.maximumf %87, %88 : vector<2x32xf32>
    %c0_73 = arith.constant 0 : index
    %c0_74 = arith.constant 0 : index
    %90 = vector.load %arg22[%c0_73, %c0_74] : memref<32x4xf32, #tpu.memory_space<vmem>>, vector<32x4xf32>
    %cst_75 = arith.constant dense<0.000000e+00> : vector<2x4xf32>
    %91 = tpu.matmul %89, %90, %cst_75 {dimension_numbers = #tpu.dot_dimension_numbers<[1], [0], [0], [1], [0, 0, 1, 1], [], []>} : vector<2x32xf32>, vector<32x4xf32>, vector<2x4xf32> -> vector<2x4xf32>
    %c0_76 = arith.constant 0 : index
    %c0_77 = arith.constant 0 : index
    %92 = vector.load %arg23[%c0_76, %c0_77] : memref<1x4xf32, #tpu.memory_space<vmem>>, vector<1x4xf32>
    %93 = vector.broadcast %92 : vector<1x4xf32> to vector<2x4xf32>
    %94 = arith.addf %91, %93 : vector<2x4xf32>
    %cst_78 = arith.constant dense<0xFF800000> : vector<2xf32>
    %95 = vector.multi_reduction <maximumf>, %94, %cst_78 [1] : vector<2x4xf32> to vector<2xf32>
    %96 = vector.shape_cast %95 : vector<2xf32> to vector<2x1xf32>
    %97 = vector.broadcast %96 : vector<2x1xf32> to vector<2x4xf32>
    %98 = arith.subf %94, %97 : vector<2x4xf32>
    %99 = math.exp %98 : vector<2x4xf32>
    %cst_79 = arith.constant dense<0.000000e+00> : vector<2xf32>
    %100 = vector.multi_reduction <add>, %99, %cst_79 [1] : vector<2x4xf32> to vector<2xf32>
    %101 = vector.shape_cast %100 : vector<2xf32> to vector<2x1xf32>
    %102 = vector.broadcast %101 : vector<2x1xf32> to vector<2x4xf32>
    %103 = arith.divf %99, %102 : vector<2x4xf32>
    %c0_80 = arith.constant 0 : index
    %c0_81 = arith.constant 0 : index
    %104 = vector.load %arg25[%c0_80, %c0_81] : memref<32x128xf32, #tpu.memory_space<vmem>>, vector<32x128xf32>
    %cst_82 = arith.constant dense<0.000000e+00> : vector<2x128xf32>
    %105 = tpu.matmul %28, %104, %cst_82 {dimension_numbers = #tpu.dot_dimension_numbers<[1], [0], [0], [1], [0, 0, 1, 1], [], []>} : vector<2x32xf32>, vector<32x128xf32>, vector<2x128xf32> -> vector<2x128xf32>
    %c0_83 = arith.constant 0 : index
    %c0_84 = arith.constant 0 : index
    %106 = vector.load %arg26[%c0_83, %c0_84] : memref<1x128xf32, #tpu.memory_space<vmem>>, vector<1x128xf32>
    %107 = vector.broadcast %106 : vector<1x128xf32> to vector<2x128xf32>
    %108 = arith.addf %105, %107 : vector<2x128xf32>
    %109 = vector.extract_strided_slice %57 {offsets = [0, 0], sizes = [2, 1], strides = [1, 1]} : vector<2x16xf32> to vector<2x1xf32>
    %110 = vector.extract_strided_slice %108 {offsets = [0, 0], sizes = [2, 32], strides = [1, 1]} : vector<2x128xf32> to vector<2x32xf32>
    %111 = vector.broadcast %109 : vector<2x1xf32> to vector<2x32xf32>
    %112 = arith.mulf %111, %110 : vector<2x32xf32>
    %113 = vector.extract_strided_slice %57 {offsets = [0, 1], sizes = [2, 1], strides = [1, 1]} : vector<2x16xf32> to vector<2x1xf32>
    %114 = vector.extract_strided_slice %108 {offsets = [0, 32], sizes = [2, 32], strides = [1, 1]} : vector<2x128xf32> to vector<2x32xf32>
    %115 = vector.broadcast %113 : vector<2x1xf32> to vector<2x32xf32>
    %116 = arith.mulf %115, %114 : vector<2x32xf32>
    %117 = arith.addf %112, %116 : vector<2x32xf32>
    %118 = vector.extract_strided_slice %57 {offsets = [0, 2], sizes = [2, 1], strides = [1, 1]} : vector<2x16xf32> to vector<2x1xf32>
    %119 = vector.extract_strided_slice %108 {offsets = [0, 64], sizes = [2, 32], strides = [1, 1]} : vector<2x128xf32> to vector<2x32xf32>
    %120 = vector.broadcast %118 : vector<2x1xf32> to vector<2x32xf32>
    %121 = arith.mulf %120, %119 : vector<2x32xf32>
    %122 = arith.addf %117, %121 : vector<2x32xf32>
    %123 = vector.extract_strided_slice %57 {offsets = [0, 3], sizes = [2, 1], strides = [1, 1]} : vector<2x16xf32> to vector<2x1xf32>
    %124 = vector.extract_strided_slice %108 {offsets = [0, 96], sizes = [2, 32], strides = [1, 1]} : vector<2x128xf32> to vector<2x32xf32>
    %125 = vector.broadcast %123 : vector<2x1xf32> to vector<2x32xf32>
    %126 = arith.mulf %125, %124 : vector<2x32xf32>
    %127 = arith.addf %122, %126 : vector<2x32xf32>
    %c0_85 = arith.constant 0 : index
    %c0_86 = arith.constant 0 : index
    %128 = vector.load %arg35[%c0_85, %c0_86] : memref<2x128xf32, #tpu.memory_space<vmem>>, vector<2x32xf32>
    tpu.vector_store %arg35[%c0_85, %c0_86], %127 {strides = array<i32>} : memref<2x128xf32, #tpu.memory_space<vmem>>, vector<2x32xf32>,
    %129 = vector.extract_strided_slice %57 {offsets = [0, 4], sizes = [2, 1], strides = [1, 1]} : vector<2x16xf32> to vector<2x1xf32>
    %130 = vector.extract_strided_slice %108 {offsets = [0, 0], sizes = [2, 32], strides = [1, 1]} : vector<2x128xf32> to vector<2x32xf32>
    %131 = vector.broadcast %129 : vector<2x1xf32> to vector<2x32xf32>
    %132 = arith.mulf %131, %130 : vector<2x32xf32>
    %133 = vector.extract_strided_slice %57 {offsets = [0, 5], sizes = [2, 1], strides = [1, 1]} : vector<2x16xf32> to vector<2x1xf32>
    %134 = vector.extract_strided_slice %108 {offsets = [0, 32], sizes = [2, 32], strides = [1, 1]} : vector<2x128xf32> to vector<2x32xf32>
    %135 = vector.broadcast %133 : vector<2x1xf32> to vector<2x32xf32>
    %136 = arith.mulf %135, %134 : vector<2x32xf32>
    %137 = arith.addf %132, %136 : vector<2x32xf32>
    %138 = vector.extract_strided_slice %57 {offsets = [0, 6], sizes = [2, 1], strides = [1, 1]} : vector<2x16xf32> to vector<2x1xf32>
    %139 = vector.extract_strided_slice %108 {offsets = [0, 64], sizes = [2, 32], strides = [1, 1]} : vector<2x128xf32> to vector<2x32xf32>
    %140 = vector.broadcast %138 : vector<2x1xf32> to vector<2x32xf32>
    %141 = arith.mulf %140, %139 : vector<2x32xf32>
    %142 = arith.addf %137, %141 : vector<2x32xf32>
    %143 = vector.extract_strided_slice %57 {offsets = [0, 7], sizes = [2, 1], strides = [1, 1]} : vector<2x16xf32> to vector<2x1xf32>
    %144 = vector.extract_strided_slice %108 {offsets = [0, 96], sizes = [2, 32], strides = [1, 1]} : vector<2x128xf32> to vector<2x32xf32>
    %145 = vector.broadcast %143 : vector<2x1xf32> to vector<2x32xf32>
    %146 = arith.mulf %145, %144 : vector<2x32xf32>
    %147 = arith.addf %142, %146 : vector<2x32xf32>
    %c0_87 = arith.constant 0 : index
    %c32 = arith.constant 32 : index
    %148 = vector.load %arg35[%c0_87, %c32] : memref<2x128xf32, #tpu.memory_space<vmem>>, vector<2x32xf32>
    tpu.vector_store %arg35[%c0_87, %c32], %147 {strides = array<i32>} : memref<2x128xf32, #tpu.memory_space<vmem>>, vector<2x32xf32>,
    %149 = vector.extract_strided_slice %57 {offsets = [0, 8], sizes = [2, 1], strides = [1, 1]} : vector<2x16xf32> to vector<2x1xf32>
    %150 = vector.extract_strided_slice %108 {offsets = [0, 0], sizes = [2, 32], strides = [1, 1]} : vector<2x128xf32> to vector<2x32xf32>
    %151 = vector.broadcast %149 : vector<2x1xf32> to vector<2x32xf32>
    %152 = arith.mulf %151, %150 : vector<2x32xf32>
    %153 = vector.extract_strided_slice %57 {offsets = [0, 9], sizes = [2, 1], strides = [1, 1]} : vector<2x16xf32> to vector<2x1xf32>
    %154 = vector.extract_strided_slice %108 {offsets = [0, 32], sizes = [2, 32], strides = [1, 1]} : vector<2x128xf32> to vector<2x32xf32>
    %155 = vector.broadcast %153 : vector<2x1xf32> to vector<2x32xf32>
    %156 = arith.mulf %155, %154 : vector<2x32xf32>
    %157 = arith.addf %152, %156 : vector<2x32xf32>
    %158 = vector.extract_strided_slice %57 {offsets = [0, 10], sizes = [2, 1], strides = [1, 1]} : vector<2x16xf32> to vector<2x1xf32>
    %159 = vector.extract_strided_slice %108 {offsets = [0, 64], sizes = [2, 32], strides = [1, 1]} : vector<2x128xf32> to vector<2x32xf32>
    %160 = vector.broadcast %158 : vector<2x1xf32> to vector<2x32xf32>
    %161 = arith.mulf %160, %159 : vector<2x32xf32>
    %162 = arith.addf %157, %161 : vector<2x32xf32>
    %163 = vector.extract_strided_slice %57 {offsets = [0, 11], sizes = [2, 1], strides = [1, 1]} : vector<2x16xf32> to vector<2x1xf32>
    %164 = vector.extract_strided_slice %108 {offsets = [0, 96], sizes = [2, 32], strides = [1, 1]} : vector<2x128xf32> to vector<2x32xf32>
    %165 = vector.broadcast %163 : vector<2x1xf32> to vector<2x32xf32>
    %166 = arith.mulf %165, %164 : vector<2x32xf32>
    %167 = arith.addf %162, %166 : vector<2x32xf32>
    %c0_88 = arith.constant 0 : index
    %c64 = arith.constant 64 : index
    %168 = vector.load %arg35[%c0_88, %c64] : memref<2x128xf32, #tpu.memory_space<vmem>>, vector<2x32xf32>
    tpu.vector_store %arg35[%c0_88, %c64], %167 {strides = array<i32>} : memref<2x128xf32, #tpu.memory_space<vmem>>, vector<2x32xf32>,
    %169 = vector.extract_strided_slice %57 {offsets = [0, 12], sizes = [2, 1], strides = [1, 1]} : vector<2x16xf32> to vector<2x1xf32>
    %170 = vector.extract_strided_slice %108 {offsets = [0, 0], sizes = [2, 32], strides = [1, 1]} : vector<2x128xf32> to vector<2x32xf32>
    %171 = vector.broadcast %169 : vector<2x1xf32> to vector<2x32xf32>
    %172 = arith.mulf %171, %170 : vector<2x32xf32>
    %173 = vector.extract_strided_slice %57 {offsets = [0, 13], sizes = [2, 1], strides = [1, 1]} : vector<2x16xf32> to vector<2x1xf32>
    %174 = vector.extract_strided_slice %108 {offsets = [0, 32], sizes = [2, 32], strides = [1, 1]} : vector<2x128xf32> to vector<2x32xf32>
    %175 = vector.broadcast %173 : vector<2x1xf32> to vector<2x32xf32>
    %176 = arith.mulf %175, %174 : vector<2x32xf32>
    %177 = arith.addf %172, %176 : vector<2x32xf32>
    %178 = vector.extract_strided_slice %57 {offsets = [0, 14], sizes = [2, 1], strides = [1, 1]} : vector<2x16xf32> to vector<2x1xf32>
    %179 = vector.extract_strided_slice %108 {offsets = [0, 64], sizes = [2, 32], strides = [1, 1]} : vector<2x128xf32> to vector<2x32xf32>
    %180 = vector.broadcast %178 : vector<2x1xf32> to vector<2x32xf32>
    %181 = arith.mulf %180, %179 : vector<2x32xf32>
    %182 = arith.addf %177, %181 : vector<2x32xf32>
    %183 = vector.extract_strided_slice %57 {offsets = [0, 15], sizes = [2, 1], strides = [1, 1]} : vector<2x16xf32> to vector<2x1xf32>
    %184 = vector.extract_strided_slice %108 {offsets = [0, 96], sizes = [2, 32], strides = [1, 1]} : vector<2x128xf32> to vector<2x32xf32>
    %185 = vector.broadcast %183 : vector<2x1xf32> to vector<2x32xf32>
    %186 = arith.mulf %185, %184 : vector<2x32xf32>
    %187 = arith.addf %182, %186 : vector<2x32xf32>
    %c0_89 = arith.constant 0 : index
    %c96 = arith.constant 96 : index
    %188 = vector.load %arg35[%c0_89, %c96] : memref<2x128xf32, #tpu.memory_space<vmem>>, vector<2x32xf32>
    tpu.vector_store %arg35[%c0_89, %c96], %187 {strides = array<i32>} : memref<2x128xf32, #tpu.memory_space<vmem>>, vector<2x32xf32>,
    %c0_90 = arith.constant 0 : index
    %c0_91 = arith.constant 0 : index
    %189 = vector.load %arg35[%c0_90, %c0_91] : memref<2x128xf32, #tpu.memory_space<vmem>>, vector<2x128xf32>
    %cst_92 = arith.constant 0.000000e+00 : f32
    %190 = vector.broadcast %cst_92 : f32 to vector<2x128xf32>
    %191 = arith.maximumf %189, %190 : vector<2x128xf32>
    %c0_93 = arith.constant 0 : index
    %c0_94 = arith.constant 0 : index
    %192 = vector.load %arg27[%c0_93, %c0_94] : memref<128x128xf32, #tpu.memory_space<vmem>>, vector<128x128xf32>
    %cst_95 = arith.constant dense<0.000000e+00> : vector<2x128xf32>
    %193 = tpu.matmul %191, %192, %cst_95 {dimension_numbers = #tpu.dot_dimension_numbers<[1], [0], [0], [1], [0, 0, 1, 1], [], []>} : vector<2x128xf32>, vector<128x128xf32>, vector<2x128xf32> -> vector<2x128xf32>
    %c0_96 = arith.constant 0 : index
    %c0_97 = arith.constant 0 : index
    %194 = vector.load %arg28[%c0_96, %c0_97] : memref<1x128xf32, #tpu.memory_space<vmem>>, vector<1x128xf32>
    %195 = vector.broadcast %194 : vector<1x128xf32> to vector<2x128xf32>
    %196 = arith.addf %193, %195 : vector<2x128xf32>
    %197 = vector.extract_strided_slice %79 {offsets = [0, 0], sizes = [2, 1], strides = [1, 1]} : vector<2x16xf32> to vector<2x1xf32>
    %198 = vector.extract_strided_slice %196 {offsets = [0, 0], sizes = [2, 32], strides = [1, 1]} : vector<2x128xf32> to vector<2x32xf32>
    %199 = vector.broadcast %197 : vector<2x1xf32> to vector<2x32xf32>
    %200 = arith.mulf %199, %198 : vector<2x32xf32>
    %201 = vector.extract_strided_slice %79 {offsets = [0, 1], sizes = [2, 1], strides = [1, 1]} : vector<2x16xf32> to vector<2x1xf32>
    %202 = vector.extract_strided_slice %196 {offsets = [0, 32], sizes = [2, 32], strides = [1, 1]} : vector<2x128xf32> to vector<2x32xf32>
    %203 = vector.broadcast %201 : vector<2x1xf32> to vector<2x32xf32>
    %204 = arith.mulf %203, %202 : vector<2x32xf32>
    %205 = arith.addf %200, %204 : vector<2x32xf32>
    %206 = vector.extract_strided_slice %79 {offsets = [0, 2], sizes = [2, 1], strides = [1, 1]} : vector<2x16xf32> to vector<2x1xf32>
    %207 = vector.extract_strided_slice %196 {offsets = [0, 64], sizes = [2, 32], strides = [1, 1]} : vector<2x128xf32> to vector<2x32xf32>
    %208 = vector.broadcast %206 : vector<2x1xf32> to vector<2x32xf32>
    %209 = arith.mulf %208, %207 : vector<2x32xf32>
    %210 = arith.addf %205, %209 : vector<2x32xf32>
    %211 = vector.extract_strided_slice %79 {offsets = [0, 3], sizes = [2, 1], strides = [1, 1]} : vector<2x16xf32> to vector<2x1xf32>
    %212 = vector.extract_strided_slice %196 {offsets = [0, 96], sizes = [2, 32], strides = [1, 1]} : vector<2x128xf32> to vector<2x32xf32>
    %213 = vector.broadcast %211 : vector<2x1xf32> to vector<2x32xf32>
    %214 = arith.mulf %213, %212 : vector<2x32xf32>
    %215 = arith.addf %210, %214 : vector<2x32xf32>
    %c0_98 = arith.constant 0 : index
    %c0_99 = arith.constant 0 : index
    %216 = vector.load %arg35[%c0_98, %c0_99] : memref<2x128xf32, #tpu.memory_space<vmem>>, vector<2x32xf32>
    tpu.vector_store %arg35[%c0_98, %c0_99], %215 {strides = array<i32>} : memref<2x128xf32, #tpu.memory_space<vmem>>, vector<2x32xf32>,
    %217 = vector.extract_strided_slice %79 {offsets = [0, 4], sizes = [2, 1], strides = [1, 1]} : vector<2x16xf32> to vector<2x1xf32>
    %218 = vector.extract_strided_slice %196 {offsets = [0, 0], sizes = [2, 32], strides = [1, 1]} : vector<2x128xf32> to vector<2x32xf32>
    %219 = vector.broadcast %217 : vector<2x1xf32> to vector<2x32xf32>
    %220 = arith.mulf %219, %218 : vector<2x32xf32>
    %221 = vector.extract_strided_slice %79 {offsets = [0, 5], sizes = [2, 1], strides = [1, 1]} : vector<2x16xf32> to vector<2x1xf32>
    %222 = vector.extract_strided_slice %196 {offsets = [0, 32], sizes = [2, 32], strides = [1, 1]} : vector<2x128xf32> to vector<2x32xf32>
    %223 = vector.broadcast %221 : vector<2x1xf32> to vector<2x32xf32>
    %224 = arith.mulf %223, %222 : vector<2x32xf32>
    %225 = arith.addf %220, %224 : vector<2x32xf32>
    %226 = vector.extract_strided_slice %79 {offsets = [0, 6], sizes = [2, 1], strides = [1, 1]} : vector<2x16xf32> to vector<2x1xf32>
    %227 = vector.extract_strided_slice %196 {offsets = [0, 64], sizes = [2, 32], strides = [1, 1]} : vector<2x128xf32> to vector<2x32xf32>
    %228 = vector.broadcast %226 : vector<2x1xf32> to vector<2x32xf32>
    %229 = arith.mulf %228, %227 : vector<2x32xf32>
    %230 = arith.addf %225, %229 : vector<2x32xf32>
    %231 = vector.extract_strided_slice %79 {offsets = [0, 7], sizes = [2, 1], strides = [1, 1]} : vector<2x16xf32> to vector<2x1xf32>
    %232 = vector.extract_strided_slice %196 {offsets = [0, 96], sizes = [2, 32], strides = [1, 1]} : vector<2x128xf32> to vector<2x32xf32>
    %233 = vector.broadcast %231 : vector<2x1xf32> to vector<2x32xf32>
    %234 = arith.mulf %233, %232 : vector<2x32xf32>
    %235 = arith.addf %230, %234 : vector<2x32xf32>
    %c0_100 = arith.constant 0 : index
    %c32_101 = arith.constant 32 : index
    %236 = vector.load %arg35[%c0_100, %c32_101] : memref<2x128xf32, #tpu.memory_space<vmem>>, vector<2x32xf32>
    tpu.vector_store %arg35[%c0_100, %c32_101], %235 {strides = array<i32>} : memref<2x128xf32, #tpu.memory_space<vmem>>, vector<2x32xf32>,
    %237 = vector.extract_strided_slice %79 {offsets = [0, 8], sizes = [2, 1], strides = [1, 1]} : vector<2x16xf32> to vector<2x1xf32>
    %238 = vector.extract_strided_slice %196 {offsets = [0, 0], sizes = [2, 32], strides = [1, 1]} : vector<2x128xf32> to vector<2x32xf32>
    %239 = vector.broadcast %237 : vector<2x1xf32> to vector<2x32xf32>
    %240 = arith.mulf %239, %238 : vector<2x32xf32>
    %241 = vector.extract_strided_slice %79 {offsets = [0, 9], sizes = [2, 1], strides = [1, 1]} : vector<2x16xf32> to vector<2x1xf32>
    %242 = vector.extract_strided_slice %196 {offsets = [0, 32], sizes = [2, 32], strides = [1, 1]} : vector<2x128xf32> to vector<2x32xf32>
    %243 = vector.broadcast %241 : vector<2x1xf32> to vector<2x32xf32>
    %244 = arith.mulf %243, %242 : vector<2x32xf32>
    %245 = arith.addf %240, %244 : vector<2x32xf32>
    %246 = vector.extract_strided_slice %79 {offsets = [0, 10], sizes = [2, 1], strides = [1, 1]} : vector<2x16xf32> to vector<2x1xf32>
    %247 = vector.extract_strided_slice %196 {offsets = [0, 64], sizes = [2, 32], strides = [1, 1]} : vector<2x128xf32> to vector<2x32xf32>
    %248 = vector.broadcast %246 : vector<2x1xf32> to vector<2x32xf32>
    %249 = arith.mulf %248, %247 : vector<2x32xf32>
    %250 = arith.addf %245, %249 : vector<2x32xf32>
    %251 = vector.extract_strided_slice %79 {offsets = [0, 11], sizes = [2, 1], strides = [1, 1]} : vector<2x16xf32> to vector<2x1xf32>
    %252 = vector.extract_strided_slice %196 {offsets = [0, 96], sizes = [2, 32], strides = [1, 1]} : vector<2x128xf32> to vector<2x32xf32>
    %253 = vector.broadcast %251 : vector<2x1xf32> to vector<2x32xf32>
    %254 = arith.mulf %253, %252 : vector<2x32xf32>
    %255 = arith.addf %250, %254 : vector<2x32xf32>
    %c0_102 = arith.constant 0 : index
    %c64_103 = arith.constant 64 : index
    %256 = vector.load %arg35[%c0_102, %c64_103] : memref<2x128xf32, #tpu.memory_space<vmem>>, vector<2x32xf32>
    tpu.vector_store %arg35[%c0_102, %c64_103], %255 {strides = array<i32>} : memref<2x128xf32, #tpu.memory_space<vmem>>, vector<2x32xf32>,
    %257 = vector.extract_strided_slice %79 {offsets = [0, 12], sizes = [2, 1], strides = [1, 1]} : vector<2x16xf32> to vector<2x1xf32>
    %258 = vector.extract_strided_slice %196 {offsets = [0, 0], sizes = [2, 32], strides = [1, 1]} : vector<2x128xf32> to vector<2x32xf32>
    %259 = vector.broadcast %257 : vector<2x1xf32> to vector<2x32xf32>
    %260 = arith.mulf %259, %258 : vector<2x32xf32>
    %261 = vector.extract_strided_slice %79 {offsets = [0, 13], sizes = [2, 1], strides = [1, 1]} : vector<2x16xf32> to vector<2x1xf32>
    %262 = vector.extract_strided_slice %196 {offsets = [0, 32], sizes = [2, 32], strides = [1, 1]} : vector<2x128xf32> to vector<2x32xf32>
    %263 = vector.broadcast %261 : vector<2x1xf32> to vector<2x32xf32>
    %264 = arith.mulf %263, %262 : vector<2x32xf32>
    %265 = arith.addf %260, %264 : vector<2x32xf32>
    %266 = vector.extract_strided_slice %79 {offsets = [0, 14], sizes = [2, 1], strides = [1, 1]} : vector<2x16xf32> to vector<2x1xf32>
    %267 = vector.extract_strided_slice %196 {offsets = [0, 64], sizes = [2, 32], strides = [1, 1]} : vector<2x128xf32> to vector<2x32xf32>
    %268 = vector.broadcast %266 : vector<2x1xf32> to vector<2x32xf32>
    %269 = arith.mulf %268, %267 : vector<2x32xf32>
    %270 = arith.addf %265, %269 : vector<2x32xf32>
    %271 = vector.extract_strided_slice %79 {offsets = [0, 15], sizes = [2, 1], strides = [1, 1]} : vector<2x16xf32> to vector<2x1xf32>
    %272 = vector.extract_strided_slice %196 {offsets = [0, 96], sizes = [2, 32], strides = [1, 1]} : vector<2x128xf32> to vector<2x32xf32>
    %273 = vector.broadcast %271 : vector<2x1xf32> to vector<2x32xf32>
    %274 = arith.mulf %273, %272 : vector<2x32xf32>
    %275 = arith.addf %270, %274 : vector<2x32xf32>
    %c0_104 = arith.constant 0 : index
    %c96_105 = arith.constant 96 : index
    %276 = vector.load %arg35[%c0_104, %c96_105] : memref<2x128xf32, #tpu.memory_space<vmem>>, vector<2x32xf32>
    tpu.vector_store %arg35[%c0_104, %c96_105], %275 {strides = array<i32>} : memref<2x128xf32, #tpu.memory_space<vmem>>, vector<2x32xf32>,
    %c0_106 = arith.constant 0 : index
    %c0_107 = arith.constant 0 : index
    %277 = vector.load %arg35[%c0_106, %c0_107] : memref<2x128xf32, #tpu.memory_space<vmem>>, vector<2x128xf32>
    %cst_108 = arith.constant 0.000000e+00 : f32
    %278 = vector.broadcast %cst_108 : f32 to vector<2x128xf32>
    %279 = arith.maximumf %277, %278 : vector<2x128xf32>
    %c0_109 = arith.constant 0 : index
    %c0_110 = arith.constant 0 : index
    %280 = vector.load %arg29[%c0_109, %c0_110] : memref<128x128xf32, #tpu.memory_space<vmem>>, vector<128x128xf32>
    %cst_111 = arith.constant dense<0.000000e+00> : vector<2x128xf32>
    %281 = tpu.matmul %279, %280, %cst_111 {dimension_numbers = #tpu.dot_dimension_numbers<[1], [0], [0], [1], [0, 0, 1, 1], [], []>} : vector<2x128xf32>, vector<128x128xf32>, vector<2x128xf32> -> vector<2x128xf32>
    %c0_112 = arith.constant 0 : index
    %c0_113 = arith.constant 0 : index
    %282 = vector.load %arg30[%c0_112, %c0_113] : memref<1x128xf32, #tpu.memory_space<vmem>>, vector<1x128xf32>
    %283 = vector.broadcast %282 : vector<1x128xf32> to vector<2x128xf32>
    %284 = arith.addf %281, %283 : vector<2x128xf32>
    %285 = vector.extract_strided_slice %103 {offsets = [0, 0], sizes = [2, 1], strides = [1, 1]} : vector<2x4xf32> to vector<2x1xf32>
    %286 = vector.extract_strided_slice %284 {offsets = [0, 0], sizes = [2, 32], strides = [1, 1]} : vector<2x128xf32> to vector<2x32xf32>
    %287 = vector.broadcast %285 : vector<2x1xf32> to vector<2x32xf32>
    %288 = arith.mulf %287, %286 : vector<2x32xf32>
    %289 = vector.extract_strided_slice %103 {offsets = [0, 1], sizes = [2, 1], strides = [1, 1]} : vector<2x4xf32> to vector<2x1xf32>
    %290 = vector.extract_strided_slice %284 {offsets = [0, 32], sizes = [2, 32], strides = [1, 1]} : vector<2x128xf32> to vector<2x32xf32>
    %291 = vector.broadcast %289 : vector<2x1xf32> to vector<2x32xf32>
    %292 = arith.mulf %291, %290 : vector<2x32xf32>
    %293 = arith.addf %288, %292 : vector<2x32xf32>
    %294 = vector.extract_strided_slice %103 {offsets = [0, 2], sizes = [2, 1], strides = [1, 1]} : vector<2x4xf32> to vector<2x1xf32>
    %295 = vector.extract_strided_slice %284 {offsets = [0, 64], sizes = [2, 32], strides = [1, 1]} : vector<2x128xf32> to vector<2x32xf32>
    %296 = vector.broadcast %294 : vector<2x1xf32> to vector<2x32xf32>
    %297 = arith.mulf %296, %295 : vector<2x32xf32>
    %298 = arith.addf %293, %297 : vector<2x32xf32>
    %299 = vector.extract_strided_slice %103 {offsets = [0, 3], sizes = [2, 1], strides = [1, 1]} : vector<2x4xf32> to vector<2x1xf32>
    %300 = vector.extract_strided_slice %284 {offsets = [0, 96], sizes = [2, 32], strides = [1, 1]} : vector<2x128xf32> to vector<2x32xf32>
    %301 = vector.broadcast %299 : vector<2x1xf32> to vector<2x32xf32>
    %302 = arith.mulf %301, %300 : vector<2x32xf32>
    %303 = arith.addf %298, %302 : vector<2x32xf32>
    %cst_114 = arith.constant 0.000000e+00 : f32
    %304 = vector.broadcast %cst_114 : f32 to vector<2x32xf32>
    %305 = arith.maximumf %303, %304 : vector<2x32xf32>
    %c0_115 = arith.constant 0 : index
    %c0_116 = arith.constant 0 : index
    %306 = vector.load %arg31[%c0_115, %c0_116] : memref<32x6xf32, #tpu.memory_space<vmem>>, vector<32x6xf32>
    %cst_117 = arith.constant dense<0.000000e+00> : vector<2x6xf32>
    %307 = tpu.matmul %305, %306, %cst_117 {dimension_numbers = #tpu.dot_dimension_numbers<[1], [0], [0], [1], [0, 0, 1, 1], [], []>} : vector<2x32xf32>, vector<32x6xf32>, vector<2x6xf32> -> vector<2x6xf32>
    %c0_118 = arith.constant 0 : index
    %c0_119 = arith.constant 0 : index
    %308 = vector.load %arg32[%c0_118, %c0_119] : memref<1x6xf32, #tpu.memory_space<vmem>>, vector<1x6xf32>
    %309 = vector.broadcast %308 : vector<1x6xf32> to vector<2x6xf32>
    %310 = arith.addf %307, %309 : vector<2x6xf32>
    %c0_120 = arith.constant 0 : index
    %c0_121 = arith.constant 0 : index
    %311 = vector.load %arg33[%c0_120, %c0_121] : memref<2x6xf32, #tpu.memory_space<vmem>>, vector<2x6xf32>
    tpu.vector_store %arg33[%c0_120, %c0_121], %310 {strides = array<i32>} : memref<2x6xf32, #tpu.memory_space<vmem>>, vector<2x6xf32>,
    return
  }
}

</mosaic_0001>

<bundles_post_ra>
// kernel: forward.1
= control target key start
LH: loop header
LB: loop body
LE: loop exit
PB: predicated region body
PF: predicated region fallthrough
CT: control target
= control target key end

     0   :  { %s2609_s6 = smov 1   ;;  %s2610_s10 = smov 2   ;;  %s3198_s0 = inlined_call_operand.smem [shape: u32[34], index: -1, kind: input, shape index: {}] }
   0x1   :  { %s2674_s5 = sld [smem:[%s3198_s0]]   ;;  %s2611_s14 = smov 3  }
   0x2   :  { %s2679_s9 = sld [smem:[%s3198_s0 + %s2609_s6]]   ;;  %s2612_s18 = smov 4  }
   0x3   :  { %s2684_s13 = sld [smem:[%s3198_s0 + %s2610_s10]]   ;;  %s2613_s22 = smov 5  }
   0x4   :  { %s2689_s17 = sld [smem:[%s3198_s0 + %s2611_s14]]   ;;  %s2614_s26 = smov 6  }
   0x5   :  { %s2694_s21 = sld [smem:[%s3198_s0 + %s2612_s18]]   ;;  %s2615_s30 = smov 7  }
   0x6   :  { %s2699_s25 = sld [smem:[%s3198_s0 + %s2613_s22]]   ;;  %s2616_s4 = smov 8  }
   0x7   :  { %s2704_s29 = sld [smem:[%s3198_s0 + %s2614_s26]]   ;;  %s2617_s10 = smov 9  }
   0x8   :  { %s2709_s3 = sld [smem:[%s3198_s0 + %s2615_s30]]   ;;  %s2618_s15 = smov 10  }
   0x9   :  { %s2714_s8 = sld [smem:[%s3198_s0 + %s2616_s4]]   ;;  %s2619_s20 = smov 11  }
   0xa   :  { %s2719_s14 = sld [smem:[%s3198_s0 + %s2617_s10]]   ;;  %s2620_s26 = smov 12  }
   0xb   :  { %s2724_s19 = sld [smem:[%s3198_s0 + %s2618_s15]]   ;;  %s2621_s1 = smov 13  }
   0xc   :  { %s2729_s24 = sld [smem:[%s3198_s0 + %s2619_s20]]   ;;  %s2622_s7 = smov 14  }
   0xd   :  { %s2734_s30 = sld [smem:[%s3198_s0 + %s2620_s26]]   ;;  %s2623_s15 = smov 15  }
   0xe   :  { %s2739_s6 = sld [smem:[%s3198_s0 + %s2621_s1]]   ;;  %s2624_s22 = smov 16  }
   0xf   :  { %s2744_s12 = sld [smem:[%s3198_s0 + %s2622_s7]]   ;;  %s2625_s28 = smov 17  }
  0x10   :  { %s2749_s20 = sld [smem:[%s3198_s0 + %s2623_s15]]   ;;  %s2626_s7 = smov 18  }
  0x11   :  { %s2754_s27 = sld [smem:[%s3198_s0 + %s2624_s22]]   ;;  %s2627_s15 = smov 19  }
  0x12   :  { %s2759_s4 = sld [smem:[%s3198_s0 + %s2625_s28]]   ;;  %s2628_s22 = smov 20  }
  0x13   :  { %s2629_s28 = smov 21  }
  0x14   :  { %3207 = sst [smem:[#allocation7_spill]] %s2739_s6 }
  0x15   :  { %s2764_s6 = sld [smem:[%s3198_s0 + %s2626_s7]]   ;;  %s2630_s7 = smov 22  }
  0x16   :  { %3208 = sst [smem:[#allocation8_spill]] %s2749_s20 }
  0x17   :  { %3209 = sst [smem:[#allocation9_spill]] %s2754_s27 }
  0x18   :  { %3210 = sst [smem:[#allocation10_spill]] %s2759_s4 }
  0x19   :  { %s2769_s20 = sld [smem:[%s3198_s0 + %s2627_s15]]   ;;  %s2631_s15 = smov 23  }
  0x1a   :  { %s2774_s27 = sld [smem:[%s3198_s0 + %s2628_s22]]   ;;  %s2632_s22 = smov 24  }
  0x1b   :  { %3211 = sst [smem:[#allocation11_spill]] %s2764_s6 }
  0x1c   :  { %s2779_s4 = sld [smem:[%s3198_s0 + %s2629_s28]]   ;;  %s2633_s28 = smov 25  }
  0x1d   :  { %s2784_s6 = sld [smem:[%s3198_s0 + %s2630_s7]]   ;;  %s2634_s7 = smov 26  }
  0x1f   :  { %3212 = sst [smem:[#allocation12_spill]] %s2769_s20 }
  0x20   :  { %3213 = sst [smem:[#allocation13_spill]] %s2774_s27 }
  0x21   :  { %s2789_s20 = sld [smem:[%s3198_s0 + %s2631_s15]]   ;;  %s2635_s15 = smov 27  }
  0x22   :  { %3214 = sst [smem:[#allocation14_spill]] %s2779_s4 }
  0x23   :  { %3215 = sst [smem:[#allocation15_spill]] %s2784_s6 }
  0x24   :  { %s2794_s27 = sld [smem:[%s3198_s0 + %s2632_s22]]   ;;  %s2636_s22 = smov 28  }
  0x25   :  { %s2799_s4 = sld [smem:[%s3198_s0 + %s2633_s28]]   ;;  %s2637_s28 = smov 29  }
  0x26   :  { %s2804_s6 = sld [smem:[%s3198_s0 + %s2634_s7]]   ;;  %s2638_s7 = smov 30  }
  0x27   :  { %3216 = sst [smem:[#allocation16_spill]] %s2789_s20 }
  0x28   :  { %s2809_s20 = sld [smem:[%s3198_s0 + %s2635_s15]]   ;;  %s2639_s15 = smov 31  }
  0x2a   :  { %3217 = sst [smem:[#allocation17_spill]] %s2794_s27 }
  0x2b   :  { %3218 = sst [smem:[#allocation18_spill]] %s2799_s4 }
  0x2c   :  { %3219 = sst [smem:[#allocation19_spill]] %s2804_s6 }
  0x2d   :  { %s2814_s27 = sld [smem:[%s3198_s0 + %s2636_s22]]   ;;  %s2640_s22 = smov 32  }
  0x2e   :  { %3220 = sst [smem:[#allocation20_spill]] %s2809_s20 }
  0x2f   :  { %s2819_s4 = sld [smem:[%s3198_s0 + %s2637_s28]]   ;;  %s2641_s28 = smov 33  }
  0x30   :  { %s2824_s6 = sld [smem:[%s3198_s0 + %s2638_s7]]  }
  0x31   :  { %s2829_s20 = sld [smem:[%s3198_s0 + %s2639_s15]]  }
  0x33   :  { %3221 = sst [smem:[#allocation21_spill]] %s2814_s27 }
  0x34   :  { %s2834_s27 = sld [smem:[%s3198_s0 + %s2640_s22]]  }
  0x35   :  { %3222 = sst [smem:[#allocation22_spill]] %s2819_s4 }
  0x36   :  { %s2839_s4 = sld [smem:[%s3198_s0 + %s2641_s28]]  }
  0x37   :  { %v140_v0 = vld [vmem:[%s2684_s13] sm:$0xff]  ;;  %v141_v1 = vld [vmem:[%s2684_s13 + $0x8] sm:$0xff]  ;;  %v2642_v2 = vmov 0.0|0.0   ;;  %vm2643_vm0 = vmmov 0   ;;  %v2644_v4 = vmov 0.0   ;;  %vm149_vm1 = vcmask 130048  }
  0x38   :  { %2360 = vmatprep.subr.bf16.mxu0 %v2642_v2  ;;  %v2361_v3 = vpack.c.bf16 %v141_v1, %v140_v0  ;;  %2151 = vmatprep.mubr.msk.f32.mxu0 %vm2643_vm0, %v2644_v4  ;;  %v224_v5 = vld [vmem:[%s2694_s21] sm:$0xff]  ;;  %v225_v6 = vld [vmem:[%s2694_s21 + $0x8] sm:$0xff] }
  0x39   :  { %2363 = vmatprep.subr.bf16.mxu1 %v2642_v2  ;;  %2162 = vmatprep.mubr.msk.f32.mxu1 %vm2643_vm0, %v2644_v4  ;;  %v139_v7 = vld [vmem:[%s2674_s5] sm:$0x3]  ;;  %v2364_v8 = vpack.c.bf16 %v225_v6, %v224_v5 }
  0x3a   :  { %2362 = vmatpush3.bf16.msra.mxu0 %v2361_v3 }
  0x3b   :  { %72 = vsyncpa [#allocation5], 0  ;;  %2165 = vmatprep.subr.mxu0 %v2644_v4  ;;  %v310_v9 = vld [vmem:[%s2704_s29] sm:$0xff]  ;;  %2365 = vmatpush3.bf16.msra.mxu1 %v2364_v8  ;;  %vm318_vm2 = vcmask 64512   ;;  %v226_v11 = vld [vmem:[%s2694_s21 + $0x10] sm:$0xff]  ;;  %vm235_vm3 = vcmask 261120  }
  0x3c   :  { %2366 = vmatprep.subr.bf16.mxu1 %v2642_v2  ;;  %v309_v10 = vld [vmem:[%s2679_s9] sm:$0x3]  ;;  %v227_v12 = vld [vmem:[%s2694_s21 + $0x18] sm:$0xff]  ;;  %v394_v15 = vld [vmem:[%s2714_s8 + $0x8] sm:$0xff]  ;;  %s3223_s0 = sld [smem:[#allocation7_spill]]  ;;  %s3224_s5 = sld [smem:[#allocation8_spill]] }
  0x3d   :  { %2152 = vmatmul.mubr.msk.f32.vlgmr.msra.gmra.mrb[0].mxu0 %vm149_vm1, %v139_v7  ;;  %v393_v13 = vld [vmem:[%s2714_s8] sm:$0xff]  ;;  %v2367_v14 = vpack.c.bf16 %v227_v12, %v226_v11  ;;  %v395_v17 = vld [vmem:[%s2714_s8 + $0x10] sm:$0xff]  ;;  %v396_v18 = vld [vmem:[%s2714_s8 + $0x18] sm:$0xff]  ;;  %s3225_s9 = sld [smem:[#allocation17_spill]]  ;;  %vm736_vm4 = vcmask 123904   ;;  %s3228_s21 = sld [smem:[#allocation10_spill]] }
  0x3e   :  { %2166 = vmatpush3.msra.mxu0 %v310_v9  ;;  %2167 = vmatprep.mubr.msk.f32.mxu0 %vm2643_vm0, %v2644_v4  ;;  %v2370_v16 = vpack.c.bf16 %v394_v15, %v393_v13  ;;  %v2373_v19 = vpack.c.bf16 %v396_v18, %v395_v17  ;;  %v2019_v20 = vld [vmem:[%s2689_s17] ss:$0 sm:$0xff]  ;;  %v481_v31 = vld [vmem:[%s2724_s19 + $0x8] sm:$0xff]  ;;  %v482_v33 = vld [vmem:[%s2724_s19 + $0x10] sm:$0xff]  ;;  %s3226_s13 = sld [smem:[#allocation9_spill]]  ;;  %s3227_s17 = sld [smem:[#allocation11_spill]] }
  0x3f   :  { %2369 = vmatprep.subr.bf16.mxu0 %v2642_v2  ;;  %2368 = vmatpush3.bf16.msra.mxu1 %v2367_v14  ;;  %v2023_v24 = vld [vmem:[%s2709_s3] ss:$0 sm:$0xff]  ;;  %v483_v34 = vld [vmem:[%s2724_s19 + $0x18] sm:$0xff]  ;;  %v566_v37 = vld [vmem:[%s2734_s30 + $0x8] sm:$0xff]  ;;  %s3230_s29 = sld [smem:[#allocation13_spill]]  ;;  %s2648_s3 = smov 16  }
  0x40   :  { %2375 = vmatprep.subr.bf16.mxu1 %v2642_v2  ;;  %v480_v30 = vld [vmem:[%s2724_s19] sm:$0xff]  ;;  %v2379_v35 = vpack.c.bf16 %v483_v34, %v482_v33  ;;  %v567_v49 = vld [vmem:[%s2734_s30 + $0x10] sm:$0xff]  ;;  %v568_v50 = vld [vmem:[%s2734_s30 + $0x18] sm:$0xff]  ;;  %s3231_s8 = sld [smem:[#allocation18_spill]]  ;;  %vm1073_vm5 = vcmask 255104   ;;  %s3233_s19 = sld [smem:[#allocation14_spill]] }
  0x41   :  { %2168 = vmatmul.mubr.msk.f32.vlgmr.msra.gmra.mrb[2].mxu0 %vm318_vm2, %v309_v10  ;;  %v2376_v32 = vpack.c.bf16 %v481_v31, %v480_v30  ;;  %v565_v36 = vld [vmem:[%s2734_s30] sm:$0xff]  ;;  %v2385_v51 = vpack.c.bf16 %v568_v50, %v567_v49  ;;  %v653_v53 = vld [vmem:[%s2744_s12 + $0x8] sm:$0xff]  ;;  %v654_v60 = vld [vmem:[%s2744_s12 + $0x10] sm:$0xff]  ;;  %v2647_v50 = vmov 5   ;;  %s2662_s30 = smov 96   ;;  %s2664_s7 = smov 32  }
  0x42   :  { %2178 = vmatprep.mubr.msk.f32.mxu0 %vm2643_vm0, %v2644_v4  ;;  %2371 = vmatpush3.bf16.msra.mxu0 %v2370_v16  ;;  %v2382_v38 = vpack.c.bf16 %v566_v37, %v565_v36  ;;  %v2021_v41 = vld [vmem:[%s2699_s25] ss:$0 sm:$0xff]  ;;  %v655_v61 = vld [vmem:[%s2744_s12 + $0x18] sm:$0xff]  ;;  %s3229_s25 = sld [smem:[#allocation12_spill]]  ;;  %vm1378_vm6 = vcmask 254976   ;;  %vm1419_vm7 = vcmask 517376  }
  0x43   :  { %2372 = vmatprep.subr.bf16.mxu0 %v2642_v2  ;;  %v2025_v42 = vld [vmem:[%s2719_s14] ss:$0 sm:$0xff]  ;;  %v2391_v62 = vpack.c.bf16 %v655_v61, %v654_v60  ;;  %v650_v12 = vld [vmem:[%s3225_s9 + $0x8] sm:$0xff]  ;;  %2537 = vset.pattern.permute.xlu1 %v2647_v50  ;;  %v2649_v61 = vmov 6   ;;  %s3232_s14 = sld [smem:[#allocation15_spill]]  ;;  %s3235_s10 = sld [smem:[#allocation20_spill]] }
  0x44   :  { %v652_v52 = vld [vmem:[%s2744_s12] sm:$0xff]  ;;  %v907_v30 = vld [vmem:[%s3227_s17 + $0x18] sm:$0xff]  ;;  %s2663_s12 = smov 64   ;;  %vm1460_vm8 = vcmask 779776   ;;  %s3236_s11 = sld [smem:[#allocation21_spill]]  ;;  %vm1501_vm9 = vcmask 1042176  }
  0x45   :  { %v2388_v54 = vpack.c.bf16 %v653_v53, %v652_v52  ;;  %v2027_v55 = vld [vmem:[%s2729_s24] ss:$0 sm:$0xff]  ;;  %v1077_v52 = vld [vmem:[%s3230_s29 + $0x8] sm:$0xff]  ;;  %s3234_s24 = sld [smem:[#allocation19_spill]]  ;;  %s3237_s15 = sld [smem:[#allocation22_spill]]  ;;  %vm1246_vm10 = vcmask 25600  }
  0x46   :  { %2374 = vmatpush3.bf16.msra.mxu0 %v2373_v19  ;;  %v2029_v63 = vld [vmem:[%s3223_s0] ss:$0 sm:$0xff]  ;;  %v821_v19 = vld [vmem:[%s3226_s13 + $0x8] sm:$0xff]  ;;  %s3238_s16 = sld [smem:[#allocation16_spill]]  ;;  %vm1970_vm11 = vcmask 41984  }
  0x47   :  { %2381 = vmatprep.subr.bf16.mxu0 %v2642_v2  ;;  %v2031_v6 = vld [vmem:[%s3224_s5] ss:$0 sm:$0xff] }
  0x48   :  { %v649_v11 = vld [vmem:[%s3225_s9] sm:$0xff] }
  0x49   :  { %v2394_v13 = vpack.c.bf16 %v650_v12, %v649_v11  ;;  %v820_v18 = vld [vmem:[%s3226_s13] sm:$0xff]  ;;  %v2660_v11 = vmov 3  }
 0x110   :  { %v219_v21 = vpop.f32.mrb[0].mxu0 }
 0x111   :  { %v220_v22 = vadd.f32 %v2019_v20, %v219_v21  ;;  %v2153_v23 = vpop.f32.mrb[1].mxu0  ;;  %v2397_v20 = vpack.c.bf16 %v821_v19, %v820_v18 }
 0x113   :  { %v223_v25 = vmax.f32 %v220_v22, 0.0 }
 0x114   :  { %v388_v26 = vpop.f32.mrb[2].mxu0 }
 0x115   :  { %v389_v27 = vadd.f32 %v2023_v24, %v388_v26  ;;  %2163 = vmatmul.mubr.msk.f32.vlgmr.msra.gmra.mrb[0].mxu1 %vm235_vm3, %v223_v25  ;;  %v2169_v28 = vpop.f32.mrb[3].mxu0  ;;  %v904_v26 = vld [vmem:[%s3227_s17] sm:$0xff] }
 0x116   :  { %2189 = vmatprep.mubr.msk.f32.mxu1 %vm2643_vm0, %v2644_v4  ;;  %2377 = vmatpush3.bf16.msra.mxu1 %v2376_v32  ;;  %v2034_v32 = vld [vmem:[%s3228_s21] ss:$0 sm:$0xff] }
 0x117   :  { %v392_v29 = vmax.f32 %v389_v27, 0.0  ;;  %2378 = vmatprep.subr.bf16.mxu1 %v2642_v2  ;;  %v905_v27 = vld [vmem:[%s3227_s17 + $0x8] sm:$0xff] }
 0x118   :  { %v2400_v28 = vpack.c.bf16 %v905_v27, %v904_v26  ;;  %v1165_v26 = vld [vmem:[%s3232_s14 + $0x18] sm:$0xff] }
 0x119   :  { %2179 = vmatmul.mubr.msk.f32.vlgmr.msra.gmra.mrb[4].mxu0 %vm235_vm3, %v392_v29  ;;  %v906_v29 = vld [vmem:[%s3227_s17 + $0x10] sm:$0xff] }
 0x11a   :  { %2200 = vmatprep.mubr.msk.f32.mxu0 %vm2643_vm0, %v2644_v4  ;;  %2380 = vmatpush3.bf16.msra.mxu1 %v2379_v35  ;;  %v2403_v31 = vpack.c.bf16 %v907_v30, %v906_v29 }
 0x11b   :  { %2387 = vmatprep.subr.bf16.mxu1 %v2642_v2  ;;  %2383 = vmatpush3.bf16.msra.mxu0 %v2382_v38  ;;  %v2645_v38 = vmov 9  }
 0x11c   :  { %2384 = vmatprep.subr.bf16.mxu0 %v2642_v2  ;;  %2538 = vset.pattern.permute.xlu0 %v2645_v38 }
 0x11f   :  { %2386 = vmatpush3.bf16.msra.mxu0 %v2385_v51  ;;  %v1076_v51 = vld [vmem:[%s3230_s29] sm:$0xff] }
 0x120   :  { %2393 = vmatprep.subr.bf16.mxu0 %v2642_v2  ;;  %v2409_v53 = vpack.c.bf16 %v1077_v52, %v1076_v51 }
 0x1e8   :  { %v305_v39 = vpop.f32.mrb[0].mxu1 }
 0x1e9   :  { %v2164_v40 = vpop.f32.mrb[1].mxu1  ;;  %v2890_v44 = vadd.f32 %v2021_v41, %v305_v39  ;;  %v2036_v39 = vld [vmem:[%s3229_s25] ss:$0 sm:$0xff] }
 0x1ec   :  { %v473_v43 = vpop.f32.mrb[4].mxu0 }
 0x1ed   :  { %v474_v45 = vadd.f32 %v2025_v42, %v473_v43  ;;  %v2180_v46 = vpop.f32.mrb[5].mxu0 }
 0x1ef   :  { %v477_v47 = vmul.f32 %v474_v45, %v2890_v44  ;;  %v2646_v45 = vmov 12  }
 0x1f1   :  { %v479_v48 = vmax.f32 %v477_v47, 0.0 }
 0x1f3   :  { %2190 = vmatmul.mubr.msk.f32.vlgmr.msra.gmra.mrb[2].mxu1 %vm235_vm3, %v479_v48 }
 0x1f4   :  { %2211 = vmatprep.mubr.msk.f32.mxu1 %vm2643_vm0, %v2644_v4  ;;  %2389 = vmatpush3.bf16.msra.mxu1 %v2388_v54 }
 0x1f5   :  { %2390 = vmatprep.subr.bf16.mxu1 %v2642_v2 }
 0x1f8   :  { %2392 = vmatpush3.bf16.msra.mxu1 %v2391_v62  ;;  %v2650_v62 = vmov 13  }
 0x1f9   :  { %2396 = vmatprep.subr.bf16.mxu1 %v2642_v2 }
 0x2c6   :  { %v560_v56 = vpop.f32.mrb[2].mxu1 }
 0x2c7   :  { %v561_v57 = vadd.f32 %v2027_v55, %v560_v56  ;;  %v2191_v58 = vpop.f32.mrb[3].mxu1  ;;  %v1078_v56 = vld [vmem:[%s3230_s29 + $0x10] sm:$0xff] }
 0x2c9   :  { %v564_v59 = vmax.f32 %v561_v57, 0.0  ;;  %v1079_v57 = vld [vmem:[%s3230_s29 + $0x18] sm:$0xff] }
 0x2ca   :  { %v2412_v58 = vpack.c.bf16 %v1079_v57, %v1078_v56 }
 0x2cb   :  { %2201 = vmatmul.mubr.msk.f32.vlgmr.msra.gmra.mrb[6].mxu0 %vm235_vm3, %v564_v59 }
 0x2cc   :  { %2218 = vmatprep.mubr.msk.f32.mxu0 %vm2643_vm0, %v2644_v4  ;;  %2395 = vmatpush3.bf16.msra.mxu0 %v2394_v13 }
 0x2cd   :  { %2399 = vmatprep.subr.bf16.mxu0 %v2642_v2 }
 0x39e   :  { %v645_v0 = vpop.f32.mrb[6].mxu0 }
 0x39f   :  { %v2910_v1 = vadd.f32 %v2029_v63, %v645_v0  ;;  %v2202_v3 = vpop.f32.mrb[7].mxu0  ;;  %v2651_v63 = vmov 10   ;;  %v2652_v0 = vmov 7  }
 0x3a0   :  { %v2653_v3 = vmov 14  }
 0x3a1   :  { %v651_v5 = vmax.f32 %v2910_v1, 0.0 }
 0x3a3   :  { %2212 = vmatmul.mubr.msk.f32.vlgmr.msra.gmra.mrb[4].mxu1 %vm235_vm3, %v651_v5  ;;  %v2654_v5 = vmov 11  }
 0x3a4   :  { %2225 = vmatprep.mubr.msk.f32.mxu1 %vm2643_vm0, %v2644_v4  ;;  %2398 = vmatpush3.bf16.msra.mxu1 %v2397_v20  ;;  %v478_v20 = vmax.f32 %v2890_v44, 0.0  ;;  %v2661_v44 = vmov 0  }
 0x3a5   :  { %2405 = vmatprep.subr.bf16.mxu1 %v2642_v2 }
 0x476   :  { %v732_v7 = vpop.f32.mrb[4].mxu1 }
 0x477   :  { %v733_v8 = vadd.f32 %v2031_v6, %v732_v7  ;;  %v2213_v9 = vpop.f32.mrb[5].mxu1  ;;  %v2655_v6 = vmov 15   ;;  %v2656_v7 = vmov 1  }
 0x478   :  { %v2658_v9 = vmov 2  }
 0x479   :  { %v737_v10 = vsel %vm736_vm4, %v733_v8, -inf }
 0x47a   :  { %738 = vmax.xlane.f32.xlu0 %v737_v10  ;;  %v2659_v10 = vmov 8  }
 0x507   :  { %v739_v14 = vpop.xlane.xlu0 %738 }
 0x508   :  { %v740_v15 = vsub.f32 %v733_v8, %v739_v14  ;;  %v2657_v8 = vmov 4   ;;  %v1259_v14 = vld [vmem:[%s3231_s8 + $0x8] sm:$0xff] }
 0x50a   :  { %v741_v16 = vmul.f32 1.442695, %v740_v15 }
 0x50c   :  { %2573 = vpow2.f32 %v741_v16  ;;  %v1260_v16 = vld [vmem:[%s3231_s8 + $0x10] sm:$0xff] }
 0x516   :  { %v2574_v17 = vpop.eup %2573 }
 0x517   :  { %2219 = vmatmul.mubr.msk.f32.vlgmr.msra.gmra.mrb[8].mxu0 %vm149_vm1, %v2574_v17 }
 0x518   :  { %2236 = vmatprep.mubr.msk.f32.mxu0 %vm2643_vm0, %v2644_v4  ;;  %2401 = vmatpush3.bf16.msra.mxu0 %v2400_v28 }
 0x519   :  { %2402 = vmatprep.subr.bf16.mxu0 %v2642_v2 }
 0x51c   :  { %2404 = vmatpush3.bf16.msra.mxu0 %v2403_v31 }
 0x51d   :  { %2414 = vmatprep.subr.bf16.mxu0 %v2642_v2 }
 0x5ea   :  { %v812_v21 = vpop.f32.mrb[8].mxu0 }
 0x5eb   :  { %2575 = vrcp.f32 %v812_v21  ;;  %v2220_v22 = vpop.f32.mrb[9].mxu0  ;;  %v1162_v21 = vld [vmem:[%s3232_s14] sm:$0xff] }
 0x5ec   :  { %v1163_v22 = vld [vmem:[%s3232_s14 + $0x8] sm:$0xff] }
 0x5f5   :  { %v2576_v23 = vpop.eup %2575 }
 0x5f6   :  { %v2927_v24 = vmul.f32 %v2576_v23, %v2574_v17  ;;  %v1261_v17 = vld [vmem:[%s3231_s8 + $0x18] sm:$0xff]  ;;  %v2415_v23 = vpack.c.bf16 %v1163_v22, %v1162_v21 }
 0x5f7   :  { %v2424_v19 = vpack.c.bf16 %v1261_v17, %v1260_v16  ;;  %v1508_v21 = vld [vmem:[%s3235_s10 + $0x18] sm:$0xff] }
 0x5f8   :  { %818 = vst.msk [vmem:[#allocation2] sm:$0x3] %vm736_vm4, %v2927_v24 }
 0x5ff   :  { %v819_v25 = vld [vmem:[#allocation2] sm:$0x3] }
 0x600   :  { %2226 = vmatmul.mubr.msk.f32.vlgmr.msra.gmra.mrb[6].mxu1 %vm149_vm1, %v819_v25  ;;  %v1164_v25 = vld [vmem:[%s3232_s14 + $0x10] sm:$0xff] }
 0x601   :  { %2407 = vmatpush3.bf16.msra.mxu1 %v2394_v13  ;;  %2243 = vmatprep.mubr.msk.f32.mxu1 %vm2643_vm0, %v2644_v4  ;;  %v1258_v13 = vld [vmem:[%s3231_s8] sm:$0xff]  ;;  %v2418_v27 = vpack.c.bf16 %v1165_v26, %v1164_v25  ;;  %v1510_v25 = vld [vmem:[%s3235_s10 + $0x28] sm:$0xff]  ;;  %v1511_v26 = vld [vmem:[%s3235_s10 + $0x30] sm:$0xff] }
 0x602   :  { %2408 = vmatprep.subr.bf16.mxu1 %v2642_v2  ;;  %v2421_v15 = vpack.c.bf16 %v1259_v14, %v1258_v13 }
 0x6d3   :  { %v898_v33 = vpop.f32.mrb[6].mxu1 }
 0x6d4   :  { %v899_v34 = vadd.f32 %v2034_v32, %v898_v33  ;;  %v2227_v35 = vpop.f32.mrb[7].mxu1 }
 0x6d5   :  { %v2039_v35 = vld [vmem:[%s3233_s19] ss:$0 sm:$0xff] }
 0x6d6   :  { %v902_v36 = vmul.f32 %v899_v34, %v2910_v1 }
 0x6d8   :  { %v903_v37 = vmax.f32 %v902_v36, 0.0 }
 0x6da   :  { %2237 = vmatmul.mubr.msk.f32.vlgmr.msra.gmra.mrb[10].mxu0 %vm235_vm3, %v903_v37 }
 0x6db   :  { %2265 = vmatprep.mubr.msk.f32.mxu0 %vm2643_vm0, %v2644_v4  ;;  %2416 = vmatpush3.bf16.msra.mxu0 %v2415_v23  ;;  %v1509_v23 = vld [vmem:[%s3235_s10 + $0x20] sm:$0xff] }
 0x6dc   :  { %2417 = vmatprep.subr.bf16.mxu0 %v2642_v2 }
 0x6df   :  { %2419 = vmatpush3.bf16.msra.mxu0 %v2418_v27  ;;  %v1512_v27 = vld [vmem:[%s3235_s10 + $0x38] sm:$0xff] }
 0x6e0   :  { %2426 = vmatprep.subr.bf16.mxu0 %v2642_v2 }
 0x7ad   :  { %v984_v40 = vpop.f32.mrb[10].mxu0 }
 0x7ae   :  { %v985_v41 = vadd.f32 %v2036_v39, %v984_v40  ;;  %v2238_v42 = vpop.f32.mrb[11].mxu0 }
 0x7b0   :  { %v988_v43 = vsel %vm736_vm4, %v985_v41, -inf }
 0x7b1   :  { %989 = vmax.xlane.f32.xlu0 %v988_v43  ;;  %v2043_v43 = vld [vmem:[%s3234_s24] ss:$0 sm:$0xff] }
 0x7c7   :  { %1427 = vperm.xlu0 %2538, %v2927_v24  }
 0x7cb   :  { %2550 = vset.pattern.permute.xlu0 %v2646_v45 }
 0x7cc   :  { %1463 = vperm.xlu0 %2550, %v2927_v24  }
 0x7d0   :  { %2552 = vset.pattern.permute.xlu0 %v2661_v44 }
 0x83e   :  { %v990_v46 = vpop.xlane.xlu0 %989 }
 0x83f   :  { %v991_v47 = vsub.f32 %v985_v41, %v990_v46 }
 0x841   :  { %v992_v48 = vmul.f32 1.442695, %v991_v47 }
 0x843   :  { %2577 = vpow2.f32 %v992_v48 }
 0x84d   :  { %v2578_v49 = vpop.eup %2577 }
 0x84e   :  { %2244 = vmatmul.mubr.msk.f32.vlgmr.msra.gmra.mrb[8].mxu1 %vm149_vm1, %v2578_v49 }
 0x84f   :  { %2254 = vmatprep.mubr.msk.f32.mxu1 %vm2643_vm0, %v2644_v4  ;;  %2410 = vmatpush3.bf16.msra.mxu1 %v2409_v53 }
 0x850   :  { %2411 = vmatprep.subr.bf16.mxu1 %v2642_v2 }
 0x853   :  { %2413 = vmatpush3.bf16.msra.mxu1 %v2412_v58 }
 0x854   :  { %2420 = vmatprep.subr.bf16.mxu1 %v2642_v2 }
 0x921   :  { %v1063_v54 = vpop.f32.mrb[8].mxu1 }
 0x922   :  { %2579 = vrcp.f32 %v1063_v54  ;;  %v2245_v55 = vpop.f32.mrb[9].mxu1 }
 0x92c   :  { %v2580_v59 = vpop.eup %2579 }
 0x92d   :  { %v2962_v60 = vmul.f32 %v2580_v59, %v2578_v49  ;;  %v1428_v49 = vpop.permute.xlu0 %1427 }
 0x92f   :  { %1070 = vrot.lane.b32.xlu1 %v2962_v60, %s2648_s3 }
 0x933   :  { %1386 = vperm.xlu1 %2537, %v2927_v24  }
 0x937   :  { %2539 = vset.pattern.permute.xlu1 %v2649_v61 }
 0x938   :  { %1396 = vperm.xlu1 %2539, %v2927_v24  }
 0x93c   :  { %2540 = vset.pattern.permute.xlu1 %v2650_v62 }
 0x93d   :  { %1468 = vperm.xlu1 %2540, %v2927_v24  }
 0x941   :  { %2541 = vset.pattern.permute.xlu1 %v2651_v63 }
 0x942   :  { %1437 = vperm.xlu1 %2541, %v2927_v24  }
 0x946   :  { %2542 = vset.pattern.permute.xlu1 %v2652_v0 }
 0x947   :  { %1406 = vperm.xlu1 %2542, %v2927_v24  }
 0x94b   :  { %2543 = vset.pattern.permute.xlu1 %v2653_v3 }
 0x94c   :  { %1478 = vperm.xlu1 %2543, %v2927_v24  }
 0x950   :  { %2544 = vset.pattern.permute.xlu1 %v2654_v5 }
 0x951   :  { %1447 = vperm.xlu1 %2544, %v2927_v24  }
 0x955   :  { %2545 = vset.pattern.permute.xlu1 %v2655_v6 }
 0x956   :  { %1488 = vperm.xlu1 %2545, %v2927_v24  }
 0x95a   :  { %2546 = vset.pattern.permute.xlu1 %v2656_v7 }
 0x95b   :  { %1349 = vperm.xlu1 %2546, %v2927_v24  }
 0x95f   :  { %2547 = vset.pattern.permute.xlu1 %v2657_v8 }
 0x960   :  { %1381 = vperm.xlu1 %2547, %v2927_v24  }
 0x964   :  { %2548 = vset.pattern.permute.xlu1 %v2658_v9 }
 0x965   :  { %1359 = vperm.xlu1 %2548, %v2927_v24  }
 0x969   :  { %2549 = vset.pattern.permute.xlu1 %v2659_v10 }
 0x96a   :  { %1422 = vperm.xlu1 %2549, %v2927_v24  }
 0x96e   :  { %2551 = vset.pattern.permute.xlu1 %v2660_v11 }
 0x96f   :  { %1369 = vperm.xlu1 %2551, %v2927_v24  }
 0x973   :  { %2554 = vset.pattern.permute.xlu1 %v2645_v38 }
 0x9a1   :  { %v1071_v12 = vpop.permute.xlu1 %1070 }
 0x9a2   :  { %1074 = vst.msk [vmem:[#allocation2] sm:$0x3] %vm1073_vm5, %v1071_v12 }
 0x9a9   :  { %v1075_v18 = vld [vmem:[#allocation2] sm:$0x3] }
 0x9aa   :  { %2255 = vmatmul.mubr.msk.f32.vlgmr.msra.gmra.mrb[10].mxu1 %vm235_vm3, %v1075_v18  ;;  %v1506_v18 = vld [vmem:[%s3235_s10 + $0x8] sm:$0xff] }
 0x9ab   :  { %2422 = vmatpush3.bf16.msra.mxu1 %v2421_v15  ;;  %2276 = vmatprep.mubr.msk.f32.mxu1 %vm2643_vm0, %v2644_v4 }
 0x9ac   :  { %2423 = vmatprep.subr.bf16.mxu1 %v2642_v2 }
 0x9af   :  { %2425 = vmatpush3.bf16.msra.mxu1 %v2424_v19  ;;  %v1507_v19 = vld [vmem:[%s3235_s10 + $0x10] sm:$0xff] }
 0x9b0   :  { %2450 = vmatprep.subr.bf16.mxu1 %v2642_v2  ;;  %v2430_v22 = vpack.c.bf16 %v1508_v21, %v1507_v19 }
 0x9b2   :  { %2277 = vmatmul.mubr.msk.f32.vlgmr.msra.gmra.mrb[12].mxu1 %vm235_vm3, %v478_v20  ;;  %v1387_v28 = vpop.permute.xlu1 %1386 }
 0x9b3   :  { %2346 = vmatprep.mubr.msk.f32.mxu1 %vm2643_vm0, %v2644_v4 }
 0x9b7   :  { %v1397_v29 = vpop.permute.xlu1 %1396 }
 0x9bc   :  { %v1469_v30 = vpop.permute.xlu1 %1468 }
 0x9c1   :  { %v1438_v31 = vpop.permute.xlu1 %1437 }
 0x9c6   :  { %v1407_v32 = vpop.permute.xlu1 %1406 }
 0x9cb   :  { %v1479_v33 = vpop.permute.xlu1 %1478 }
 0x9d0   :  { %v1448_v34 = vpop.permute.xlu1 %1447 }
 0x9d5   :  { %v1489_v36 = vpop.permute.xlu1 %1488 }
 0x9da   :  { %v1350_v42 = vpop.permute.xlu1 %1349 }
 0x9df   :  { %v1382_v53 = vpop.permute.xlu1 %1381 }
 0x9e4   :  { %v1360_v55 = vpop.permute.xlu1 %1359 }
 0x9e9   :  { %v1423_v12 = vpop.permute.xlu1 %1422 }
 0x9ee   :  { %v1370_v14 = vpop.permute.xlu1 %1369 }
 0xa7d   :  { %v1156_v37 = vpop.f32.mrb[10].mxu1 }
 0xa7e   :  { %v1157_v38 = vadd.f32 %v2039_v35, %v1156_v37  ;;  %v2256_v39 = vpop.f32.mrb[11].mxu1  ;;  %v1515_v35 = vld [vmem:[%s3235_s10 + $0x50] sm:$0xff] }
 0xa80   :  { %v1160_v40 = vmul.f32 %v1157_v38, %v2910_v1 }
 0xa82   :  { %v1161_v41 = vmax.f32 %v1160_v40, 0.0 }
 0xa84   :  { %2266 = vmatmul.mubr.msk.f32.vlgmr.msra.gmra.mrb[12].mxu0 %vm235_vm3, %v1161_v41 }
 0xa85   :  { %v1338_v46 = vpop.f32.mrb[12].mxu1  ;;  %2311 = vmatprep.mubr.msk.f32.mxu0 %vm2643_vm0, %v2644_v4 }
 0xa86   :  { %v3017_v47 = vadd.f32 %v2043_v43, %v1338_v46  ;;  %v2278_v48 = vpop.f32.mrb[13].mxu1  ;;  %v1518_v43 = vld [vmem:[%s3235_s10 + $0x68] sm:$0xff]  ;;  %v1519_v46 = vld [vmem:[%s3235_s10 + $0x70] sm:$0xff] }
 0xa88   :  { %v1389_v51 = vmul.f32 %v1387_v28, %v3017_v47  ;;  %v1430_v52 = vmul.f32 %v1428_v49, %v3017_v47  ;;  %v1399_v1 = vmul.f32 %v1397_v29, %v3017_v47  ;;  %v1471_v54 = vmul.f32 %v1469_v30, %v3017_v47  ;;  %v1464_v29 = vpop.permute.xlu0 %1463  ;;  %v1513_v30 = vld [vmem:[%s3235_s10 + $0x40] sm:$0xff] }
 0xa89   :  { %v1440_v56 = vmul.f32 %v1438_v31, %v3017_v47  ;;  %v1409_v57 = vmul.f32 %v1407_v32, %v3017_v47  ;;  %v1481_v58 = vmul.f32 %v1479_v33, %v3017_v47  ;;  %v1450_v59 = vmul.f32 %v1448_v34, %v3017_v47  ;;  %v1514_v31 = vld [vmem:[%s3235_s10 + $0x48] sm:$0xff] }
 0xa8a   :  { %1391 = vrot.lane.b32.xlu1 %v1389_v51, %s2662_s30  ;;  %1432 = vrot.lane.b32.xlu0 %v1430_v52, %s2662_s30  ;;  %v1491_v13 = vmul.f32 %v1489_v36, %v3017_v47  ;;  %v1352_v15 = vmul.f32 %v1350_v42, %v3017_v47  ;;  %v1372_v16 = vmul.f32 %v1370_v14, %v3017_v47  ;;  %v1516_v36 = vld [vmem:[%s3235_s10 + $0x58] sm:$0xff]  ;;  %v1517_v42 = vld [vmem:[%s3235_s10 + $0x60] sm:$0xff] }
 0xa8b   :  { %v1362_v17 = vmul.f32 %v1360_v55, %v3017_v47  ;;  %v2436_v28 = vpack.c.bf16 %v1512_v27, %v1511_v26  ;;  %v2439_v32 = vpack.c.bf16 %v1514_v31, %v1513_v30  ;;  %v1384_v37 = vmul.f32 %v1382_v53, %v3017_v47  ;;  %v1520_v52 = vld [vmem:[%s3235_s10 + $0x78] sm:$0xff]  ;;  %v2045_v26 = vld [vmem:[%s3236_s11] ss:$0 sm:$0xff] }
 0xa8c   :  { %v2442_v38 = vpack.c.bf16 %v1516_v36, %v1515_v35  ;;  %v1425_v48 = vmul.f32 %v1423_v12, %v3017_v47  ;;  %v2445_v51 = vpack.c.bf16 %v1518_v43, %v1517_v42  ;;  %v2448_v53 = vpack.c.bf16 %v1520_v52, %v1519_v46 }
 0xa8e   :  { %1401 = vrot.lane.b32.xlu1 %v1399_v1, %s2663_s12  ;;  %1473 = vrot.lane.b32.xlu0 %v1471_v54, %s2662_s30 }
 0xa92   :  { %1442 = vrot.lane.b32.xlu1 %v1440_v56, %s2663_s12  ;;  %1411 = vrot.lane.b32.xlu0 %v1409_v57, %s2664_s7  ;;  %v1466_v57 = vmul.f32 %v1464_v29, %v3017_v47 }
 0xa96   :  { %1483 = vrot.lane.b32.xlu1 %v1481_v58, %s2663_s12  ;;  %1452 = vrot.lane.b32.xlu0 %v1450_v59, %s2664_s7 }
 0xa9a   :  { %1493 = vrot.lane.b32.xlu1 %v1491_v13, %s2664_s7  ;;  %1344 = vperm.xlu0 %2552, %v2927_v24   ;;  %v1505_v24 = vld [vmem:[%s3235_s10] sm:$0xff] }
 0xa9b   :  { %v2427_v20 = vpack.c.bf16 %v1506_v18, %v1505_v24 }
 0xa9d   :  { %2428 = vmatpush3.bf16.msra.mxu0 %v2427_v20 }
 0xa9e   :  { %1354 = vrot.lane.b32.xlu1 %v1352_v15, %s2662_s30  ;;  %1374 = vrot.lane.b32.xlu0 %v1372_v16, %s2664_s7 }
 0xa9f   :  { %2553 = vset.pattern.permute.xlu0 %v2647_v50  ;;  %2429 = vmatprep.subr.bf16.mxu0 %v2642_v2  ;;  %v2433_v50 = vpack.c.bf16 %v1510_v25, %v1509_v23 }
 0xaa1   :  { %2431 = vmatpush3.bf16.msra.mxu0 %v2430_v22 }
 0xaa2   :  { %1364 = vrot.lane.b32.xlu1 %v1362_v17, %s2663_s12  ;;  %2432 = vmatprep.subr.bf16.mxu0 %v2642_v2 }
 0xaa5   :  { %2434 = vmatpush3.bf16.msra.mxu0 %v2433_v50 }
 0xaa6   :  { %2435 = vmatprep.subr.bf16.mxu0 %v2642_v2 }
 0xaa9   :  { %2437 = vmatpush3.bf16.msra.mxu0 %v2436_v28 }
 0xaaa   :  { %2438 = vmatprep.subr.bf16.mxu0 %v2642_v2 }
 0xaad   :  { %2440 = vmatpush3.bf16.msra.mxu0 %v2439_v32 }
 0xaae   :  { %2441 = vmatprep.subr.bf16.mxu0 %v2642_v2 }
 0xab1   :  { %2443 = vmatpush3.bf16.msra.mxu0 %v2442_v38 }
 0xab2   :  { %2444 = vmatprep.subr.bf16.mxu0 %v2642_v2 }
 0xab5   :  { %2446 = vmatpush3.bf16.msra.mxu0 %v2445_v51 }
 0xab6   :  { %2447 = vmatprep.subr.bf16.mxu0 %v2642_v2 }
 0xab9   :  { %2449 = vmatpush3.bf16.msra.mxu0 %v2448_v53  ;;  %v1759_v53 = vld [vmem:[%s3237_s15 + $0x18] sm:$0xff] }
 0xaba   :  { %2474 = vmatprep.subr.bf16.mxu0 %v2642_v2 }
 0xafc   :  { %v1392_v33 = vpop.permute.xlu1 %1391  ;;  %v1433_v34 = vpop.permute.xlu0 %1432 }
 0xafd   :  { %v1394_v41 = vadd.f32 %v1392_v33, %v1384_v37  ;;  %v1435_v55 = vadd.f32 %v1433_v34, %v1425_v48 }
 0xb00   :  { %v1402_v39 = vpop.permute.xlu1 %1401  ;;  %v1474_v40 = vpop.permute.xlu0 %1473 }
 0xb01   :  { %v1404_v49 = vadd.f32 %v1402_v39, %v1394_v41  ;;  %v1476_v14 = vadd.f32 %v1474_v40, %v1466_v57 }
 0xb04   :  { %v1443_v1 = vpop.permute.xlu1 %1442  ;;  %v1412_v54 = vpop.permute.xlu0 %1411 }
 0xb05   :  { %v1414_v56 = vadd.f32 %v1412_v54, %v1404_v49  ;;  %v1445_v58 = vadd.f32 %v1443_v1, %v1435_v55  ;;  %v1757_v54 = vld [vmem:[%s3237_s15 + $0x8] sm:$0xff]  ;;  %v1758_v55 = vld [vmem:[%s3237_s15 + $0x10] sm:$0xff] }
 0xb06   :  { %v2454_v57 = vpack.c.bf16 %v1759_v53, %v1758_v55 }
 0xb07   :  { %1416 = vrot.lane.b32.xlu1 %v1414_v56, %s2664_s7 }
 0xb08   :  { %v1484_v59 = vpop.permute.xlu1 %1483  ;;  %v1453_v13 = vpop.permute.xlu0 %1452 }
 0xb09   :  { %v1455_v12 = vadd.f32 %v1453_v13, %v1445_v58  ;;  %v1486_v15 = vadd.f32 %v1484_v59, %v1476_v14  ;;  %v1760_v58 = vld [vmem:[%s3237_s15 + $0x20] sm:$0xff]  ;;  %v1761_v59 = vld [vmem:[%s3237_s15 + $0x28] sm:$0xff]  ;;  %v1762_v13 = vld [vmem:[%s3237_s15 + $0x30] sm:$0xff] }
 0xb0a   :  { %v1763_v14 = vld [vmem:[%s3237_s15 + $0x38] sm:$0xff] }
 0xb0b   :  { %1457 = vrot.lane.b32.xlu0 %v1455_v12, %s2663_s12  ;;  %v2460_v12 = vpack.c.bf16 %v1763_v14, %v1762_v13  ;;  %v1886_v14 = vld [vmem:[%s2829_s20] sm:$0xff] }
 0xb0c   :  { %v1494_v16 = vpop.permute.xlu1 %1493 }
 0xb0d   :  { %v1496_v17 = vadd.f32 %v1494_v16, %v1486_v15  ;;  %v1764_v15 = vld [vmem:[%s3237_s15 + $0x40] sm:$0xff]  ;;  %v1765_v16 = vld [vmem:[%s3237_s15 + $0x48] sm:$0xff] }
 0xb0f   :  { %1498 = vrot.lane.b32.xlu1 %v1496_v17, %s2662_s30  ;;  %1640 = vperm.xlu0 %2553, %v2962_v60   ;;  %v2463_v17 = vpack.c.bf16 %v1765_v16, %v1764_v15  ;;  %v2046_v16 = vld [vmem:[%s2824_s6] ss:$0 sm:$0xff]  ;;  %s2665_s6 = smov [#allocation4]  }
 0xb10   :  { %v1355_v24 = vpop.permute.xlu1 %1354 }
 0xb13   :  { %1680 = vperm.xlu1 %2554, %v2962_v60   ;;  %2556 = vset.pattern.permute.xlu0 %v2650_v62 }
 0xb14   :  { %1720 = vperm.xlu0 %2556, %v2962_v60   ;;  %v1365_v21 = vpop.permute.xlu1 %1364 }
 0xb17   :  { %2555 = vset.pattern.permute.xlu1 %v2649_v61 }
 0xb18   :  { %1650 = vperm.xlu1 %2555, %v2962_v60   ;;  %2559 = vset.pattern.permute.xlu0 %v2653_v3 }
 0xb19   :  { %1730 = vperm.xlu0 %2559, %v2962_v60   ;;  %v1345_v18 = vpop.permute.xlu0 %1344 }
 0xb1a   :  { %v1347_v19 = vmul.f32 %v1345_v18, %v3017_v47 }
 0xb1c   :  { %v1357_v20 = vadd.f32 %v1355_v24, %v1347_v19  ;;  %2557 = vset.pattern.permute.xlu1 %v2651_v63  ;;  %v1766_v19 = vld [vmem:[%s3237_s15 + $0x50] sm:$0xff] }
 0xb1d   :  { %1690 = vperm.xlu1 %2557, %v2962_v60   ;;  %2564 = vset.pattern.permute.xlu0 %v2659_v10  ;;  %v1375_v61 = vpop.permute.xlu0 %1374 }
 0xb1e   :  { %v1367_v62 = vadd.f32 %v1365_v21, %v1357_v20  ;;  %1675 = vperm.xlu0 %2564, %v2962_v60   ;;  %v1767_v20 = vld [vmem:[%s3237_s15 + $0x58] sm:$0xff] }
 0xb20   :  { %v1377_v22 = vadd.f32 %v1375_v61, %v1367_v62  ;;  %v2466_v62 = vpack.c.bf16 %v1767_v20, %v1766_v19 }
 0xb21   :  { %2558 = vset.pattern.permute.xlu1 %v2652_v0 }
 0xb22   :  { %1379 = vst.msk [vmem:[#allocation3] sm:$0x3] %vm1378_vm6, %v1377_v22  ;;  %1660 = vperm.xlu1 %2558, %v2962_v60   ;;  %2565 = vset.pattern.permute.xlu0 %v2656_v7 }
 0xb23   :  { %1604 = vperm.xlu0 %2565, %v2962_v60  }
 0xb26   :  { %2560 = vset.pattern.permute.xlu1 %v2654_v5 }
 0xb27   :  { %1700 = vperm.xlu1 %2560, %v2962_v60  }
 0xb2b   :  { %2561 = vset.pattern.permute.xlu1 %v2655_v6 }
 0xb2c   :  { %1740 = vperm.xlu1 %2561, %v2962_v60  }
 0xb30   :  { %2562 = vset.pattern.permute.xlu1 %v2657_v8 }
 0xb31   :  { %1635 = vperm.xlu1 %2562, %v2962_v60  }
 0xb35   :  { %2563 = vset.pattern.permute.xlu1 %v2658_v9 }
 0xb36   :  { %1614 = vperm.xlu1 %2563, %v2962_v60  }
 0xb3a   :  { %2566 = vset.pattern.permute.xlu1 %v2646_v45 }
 0xb3b   :  { %1715 = vperm.xlu1 %2566, %v2962_v60  }
 0xb3f   :  { %2567 = vset.pattern.permute.xlu1 %v2660_v11 }
 0xb40   :  { %1624 = vperm.xlu1 %2567, %v2962_v60  }
 0xb44   :  { %2568 = vset.pattern.permute.xlu1 %v2661_v44 }
 0xb57   :  { %v3106_v63 = vpop.f32.mrb[12].mxu0 }
 0xb58   :  { %v2267_v0 = vpop.f32.mrb[13].mxu0 }
 0xb79   :  { %v1417_v3 = vpop.permute.xlu1 %1416 }
 0xb7a   :  { %1420 = vst.msk [vmem:[#allocation3] sm:$0x3] %vm1419_vm7, %v1417_v3  ;;  %v1768_v3 = vld [vmem:[%s3237_s15 + $0x60] sm:$0xff] }
 0xb7d   :  { %v1458_v5 = vpop.permute.xlu0 %1457 }
 0xb7e   :  { %1461 = vst.msk [vmem:[#allocation3] sm:$0x3] %vm1460_vm8, %v1458_v5  ;;  %v1769_v5 = vld [vmem:[%s3237_s15 + $0x68] sm:$0xff] }
 0xb81   :  { %v1499_v45 = vpop.permute.xlu1 %1498 }
 0xb82   :  { %1502 = vst.msk [vmem:[#allocation3] sm:$0x3] %vm1501_vm9, %v1499_v45  ;;  %v1770_v45 = vld [vmem:[%s3237_s15 + $0x70] sm:$0xff] }
 0xb89   :  { %v1503_v6 = vld [vmem:[#allocation3] sm:$0x3] }
 0xb8a   :  { %v1504_v7 = vmax.f32 %v1503_v6, 0.0 }
 0xb8c   :  { %2312 = vmatmul.mubr.f32.vlgmr.msra.gmra.mrb[14].mxu0 %v1504_v7 }
 0xb8d   :  { %2357 = vmatprep.mubr.msk.f32.mxu0 %vm2643_vm0, %v2644_v4 }
 0xb8e   :  { %v1641_v50 = vpop.permute.xlu0 %1640 }
 0xb92   :  { %v1681_v8 = vpop.permute.xlu1 %1680 }
 0xb93   :  { %v1721_v33 = vpop.permute.xlu0 %1720 }
 0xb97   :  { %v1651_v10 = vpop.permute.xlu1 %1650 }
 0xb98   :  { %v1731_v36 = vpop.permute.xlu0 %1730 }
 0xb9c   :  { %v1691_v47 = vpop.permute.xlu1 %1690 }
 0xb9d   :  { %v1676_v42 = vpop.permute.xlu0 %1675 }
 0xba1   :  { %v1661_v23 = vpop.permute.xlu1 %1660 }
 0xba2   :  { %v1605_v48 = vpop.permute.xlu0 %1604 }
 0xba6   :  { %v1701_v25 = vpop.permute.xlu1 %1700 }
 0xbab   :  { %v1741_v30 = vpop.permute.xlu1 %1740 }
 0xbb0   :  { %v1636_v35 = vpop.permute.xlu1 %1635 }
 0xbb5   :  { %v1615_v39 = vpop.permute.xlu1 %1614 }
 0xbba   :  { %v1716_v46 = vpop.permute.xlu1 %1715 }
 0xbbf   :  { %v1625_v52 = vpop.permute.xlu1 %1624 }
 0xc5f   :  { %v1594_v27 = vpop.f32.mrb[14].mxu0 }
 0xc60   :  { %v3114_v28 = vadd.f32 %v2045_v26, %v1594_v27  ;;  %v2313_v29 = vpop.f32.mrb[15].mxu0 }
 0xc62   :  { %v1683_v31 = vmul.f32 %v1681_v8, %v3114_v28  ;;  %v1643_v32 = vmul.f32 %v1641_v50, %v3114_v28  ;;  %v1723_v4 = vmul.f32 %v1721_v33, %v3114_v28  ;;  %v1653_v34 = vmul.f32 %v1651_v10, %v3114_v28  ;;  %v1771_v10 = vld [vmem:[%s3237_s15 + $0x78] sm:$0xff] }
 0xc63   :  { %v1663_v37 = vmul.f32 %v1661_v23, %v3114_v28  ;;  %v1693_v38 = vmul.f32 %v1691_v47, %v3114_v28  ;;  %v1703_v40 = vmul.f32 %v1701_v25, %v3114_v28  ;;  %v1733_v41 = vmul.f32 %v1731_v36, %v3114_v28 }
 0xc64   :  { %1685 = vrot.lane.b32.xlu1 %v1683_v31, %s2662_s30  ;;  %1645 = vrot.lane.b32.xlu0 %v1643_v32, %s2662_s30  ;;  %v1743_v43 = vmul.f32 %v1741_v30, %v3114_v28  ;;  %v1617_v49 = vmul.f32 %v1615_v39, %v3114_v28  ;;  %v1607_v51 = vmul.f32 %v1605_v48, %v3114_v28 }
 0xc65   :  { %v1627_v1 = vmul.f32 %v1625_v52, %v3114_v28  ;;  %v1638_v21 = vmul.f32 %v1636_v35, %v3114_v28  ;;  %v1678_v6 = vmul.f32 %v1676_v42, %v3114_v28  ;;  %v2469_v8 = vpack.c.bf16 %v1769_v5, %v1768_v3 }
 0xc66   :  { %v2472_v26 = vpack.c.bf16 %v1771_v10, %v1770_v45  ;;  %v1718_v27 = vmul.f32 %v1716_v46, %v3114_v28  ;;  %v2041_v46 = vld [vmem:[%s3238_s16] ss:$0 sm:$0xff] }
 0xc67   :  { %v1243_v48 = vadd.f32 %v2041_v46, %v3106_v63  ;;  %v2047_v10 = vld [vmem:[%s2834_s27] ss:$0 sm:$0xff] }
 0xc68   :  { %1725 = vrot.lane.b32.xlu1 %v1723_v4, %s2662_s30  ;;  %1655 = vrot.lane.b32.xlu0 %v1653_v34, %s2663_s12 }
 0xc6c   :  { %1665 = vrot.lane.b32.xlu1 %v1663_v37, %s2664_s7  ;;  %1695 = vrot.lane.b32.xlu0 %v1693_v38, %s2663_s12 }
 0xc70   :  { %1705 = vrot.lane.b32.xlu1 %v1703_v40, %s2664_s7  ;;  %1735 = vrot.lane.b32.xlu0 %v1733_v41, %s2663_s12 }
 0xc74   :  { %1599 = vperm.xlu1 %2568, %v2962_v60   ;;  %1745 = vrot.lane.b32.xlu0 %v1743_v43, %s2664_s7  ;;  %v1756_v60 = vld [vmem:[%s3237_s15] sm:$0xff] }
 0xc75   :  { %v2451_v56 = vpack.c.bf16 %v1757_v54, %v1756_v60 }
 0xc77   :  { %2452 = vmatpush3.bf16.msra.mxu1 %v2451_v56 }
 0xc78   :  { %1619 = vrot.lane.b32.xlu1 %v1617_v49, %s2663_s12  ;;  %1609 = vrot.lane.b32.xlu0 %v1607_v51, %s2662_s30  ;;  %v1247_v49 = vsel %vm1246_vm10, %v1243_v48, -inf }
 0xc79   :  { %2569 = vset.pattern.permute.xlu1 %v2658_v9  ;;  %2453 = vmatprep.subr.bf16.mxu1 %v2642_v2  ;;  %v2457_v9 = vpack.c.bf16 %v1761_v59, %v1760_v58 }
 0xc7b   :  { %2455 = vmatpush3.bf16.msra.mxu1 %v2454_v57 }
 0xc7c   :  { %1629 = vrot.lane.b32.xlu0 %v1627_v1, %s2664_s7  ;;  %2456 = vmatprep.subr.bf16.mxu1 %v2642_v2 }
 0xc7f   :  { %2458 = vmatpush3.bf16.msra.mxu1 %v2457_v9 }
 0xc80   :  { %2459 = vmatprep.subr.bf16.mxu1 %v2642_v2 }
 0xc83   :  { %2461 = vmatpush3.bf16.msra.mxu1 %v2460_v12  ;;  %v1887_v12 = vld [vmem:[%s2829_s20 + $0x8] sm:$0xff] }
 0xc84   :  { %2462 = vmatprep.subr.bf16.mxu1 %v2642_v2  ;;  %v2475_v15 = vpack.c.bf16 %v1887_v12, %v1886_v14 }
 0xc86   :  { %2476 = vmatpush3.bf16.msra.mxu0 %v2475_v15 }
 0xc87   :  { %2464 = vmatpush3.bf16.msra.mxu1 %v2463_v17  ;;  %2477 = vmatprep.subr.bf16.mxu0 %v2642_v2 }
 0xc88   :  { %2465 = vmatprep.subr.bf16.mxu1 %v2642_v2 }
 0xc8b   :  { %2467 = vmatpush3.bf16.msra.mxu1 %v2466_v62 }
 0xc8c   :  { %2468 = vmatprep.subr.bf16.mxu1 %v2642_v2 }
 0xc8f   :  { %2470 = vmatpush3.bf16.msra.mxu1 %v2469_v8 }
 0xc90   :  { %2471 = vmatprep.subr.bf16.mxu1 %v2642_v2 }
 0xc93   :  { %2473 = vmatpush3.bf16.msra.mxu1 %v2472_v26 }
 0xcd6   :  { %v1686_v24 = vpop.permute.xlu1 %1685  ;;  %v1646_v18 = vpop.permute.xlu0 %1645 }
 0xcd7   :  { %v1648_v0 = vadd.f32 %v1646_v18, %v1638_v21  ;;  %v1688_v25 = vadd.f32 %v1686_v24, %v1678_v6  ;;  %v1888_v24 = vld [vmem:[%s2829_s20 + $0x10] sm:$0xff]  ;;  %v1889_v18 = vld [vmem:[%s2829_s20 + $0x18] sm:$0xff]  ;;  %s1978_s20 = sshll.u32 %s2665_s6, 4  ;;  %s1979_s20 = int_to_ptr.vmem [resolvable:$true] %s1978_s20 }
 0xcd8   :  { %v2478_v21 = vpack.c.bf16 %v1889_v18, %v1888_v24  ;;  %s2585_s18 = scalar_lea.vmem %s1979_s20, 32  ;;  %p2590_p1 = scmp.lt.s32.totalorder %s1979_s20, %s1979_s20 }
 0xcd9   :  { %p2586_p0 = scmp.ne.s32.totalorder %s1979_s20, %s2585_s18  ;;  %p2591_p2 = scmp.lt.s32.totalorder %s2585_s18, %s2585_s18 }
 0xcda   :  { %v1726_v61 = vpop.permute.xlu1 %1725  ;;  %v1656_v22 = vpop.permute.xlu0 %1655  ;;  %2479 = vmatpush3.bf16.msra.mxu0 %v2478_v21 }
 0xcdb   :  { %v1658_v7 = vadd.f32 %v1656_v22, %v1648_v0  ;;  %v1728_v32 = vadd.f32 %v1726_v61, %v1718_v27  ;;  %p2592_p3 = por %p2591_p2, %p2590_p1 }
 0xcdd   :  { %p2593_p4 = pnand %p2592_p3, %p2586_p0 }
 0xcde   :  { %v1666_v47 = vpop.permute.xlu1 %1665  ;;  %v1696_v23 = vpop.permute.xlu0 %1695 }
 0xcdf   :  { %v1668_v50 = vadd.f32 %v1666_v47, %v1658_v7  ;;  %v1698_v29 = vadd.f32 %v1696_v23, %v1688_v25 }
 0xce1   :  { %1670 = vrot.lane.b32.xlu1 %v1668_v50, %s2664_s7 }
 0xce2   :  { %v1706_v30 = vpop.permute.xlu1 %1705  ;;  %v1736_v31 = vpop.permute.xlu0 %1735 }
 0xce3   :  { %v1708_v33 = vadd.f32 %v1706_v30, %v1698_v29  ;;  %v1738_v4 = vadd.f32 %v1736_v31, %v1728_v32 }
 0xce5   :  { %1710 = vrot.lane.b32.xlu0 %v1708_v33, %s2663_s12 }
 0xce6   :  { %v1746_v34 = vpop.permute.xlu0 %1745 }
 0xce7   :  { %v1748_v35 = vadd.f32 %v1746_v34, %v1738_v4 }
 0xce9   :  { %1750 = vrot.lane.b32.xlu1 %v1748_v35, %s2662_s30 }
 0xcea   :  { %v1610_v36 = vpop.permute.xlu0 %1609 }
 0xcee   :  { %v1630_v42 = vpop.permute.xlu0 %1629 }
 0xcf3   :  { %v1600_v37 = vpop.permute.xlu1 %1599 }
 0xcf4   :  { %v1602_v38 = vmul.f32 %v1600_v37, %v3114_v28 }
 0xcf6   :  { %v1612_v39 = vadd.f32 %v1610_v36, %v1602_v38 }
 0xcf7   :  { %v1620_v40 = vpop.permute.xlu1 %1619 }
 0xcf8   :  { %v1622_v41 = vadd.f32 %v1620_v40, %v1612_v39 }
 0xcfa   :  { %v1632_v43 = vadd.f32 %v1630_v42, %v1622_v41 }
 0xcfc   :  { %1633 = vst.msk [vmem:[#allocation3] sm:$0x3] %vm1378_vm6, %v1632_v43 }
 0xd04   :  { %1248 = vmax.xlane.f32.xlu0 %v1247_v49 }
 0xd53   :  { %v1671_v51 = vpop.permute.xlu1 %1670 }
 0xd54   :  { %1673 = vst.msk [vmem:[#allocation3] sm:$0x3] %vm1419_vm7, %v1671_v51 }
 0xd57   :  { %v1711_v52 = vpop.permute.xlu0 %1710 }
 0xd58   :  { %1713 = vst.msk [vmem:[#allocation3] sm:$0x3] %vm1460_vm8, %v1711_v52 }
 0xd5b   :  { %v1751_v28 = vpop.permute.xlu1 %1750 }
 0xd5c   :  { %1753 = vst.msk [vmem:[#allocation3] sm:$0x3] %vm1501_vm9, %v1751_v28 }
 0xd63   :  { %v1754_v1 = vld [vmem:[#allocation3] sm:$0x3] }
 0xd64   :  { %v1755_v60 = vmax.f32 %v1754_v1, 0.0 }
 0xd66   :  { %2347 = vmatmul.mubr.f32.vlgmr.msra.gmra.mrb[14].mxu1 %v1755_v60 }
 0xd91   :  { %v1249_v54 = vpop.xlane.xlu0 %1248 }
 0xd92   :  { %v1250_v55 = vsub.f32 %v1243_v48, %v1249_v54 }
 0xd94   :  { %v1251_v56 = vmul.f32 1.442695, %v1250_v55 }
 0xd96   :  { %2581 = vpow2.f32 %v1251_v56 }
 0xda0   :  { %v2582_v63 = vpop.eup %2581 }
 0xda1   :  { %v1253_v53 = vsel %vm1246_vm10, %v2582_v63, 0.0 }
 0xda2   :  { %1254 = vadd.xlane.f32.xlu1 %v1253_v53 }
 0xe2f   :  { %v1255_v57 = vpop.xlane.xlu1 %1254 }
 0xe30   :  { %2583 = vrcp.f32 %v1255_v57 }
 0xe39   :  { %v1845_v58 = vpop.f32.mrb[14].mxu1 }
 0xe3a   :  { %v2584_v59 = vpop.eup %2583  ;;  %v2348_v9 = vpop.f32.mrb[15].mxu1  ;;  %v1846_v17 = vadd.f32 %v2046_v16, %v1845_v58 }
 0xe3b   :  { %v1257_v13 = vmul.f32 %v2584_v59, %v2582_v63 }
 0xe3d   :  { %1866 = vperm.xlu1 %2569, %v1257_v13   ;;  %1856 = vperm.xlu0 %2565, %v1257_v13  }
 0xe41   :  { %2570 = vset.pattern.permute.xlu1 %v2660_v11  ;;  %2572 = vset.pattern.permute.xlu0 %v2660_v11 }
 0xe42   :  { %1876 = vperm.xlu1 %2570, %v1257_v13  }
 0xe46   :  { %2571 = vset.pattern.permute.xlu1 %v2661_v44 }
 0xe47   :  { %1851 = vperm.xlu1 %2571, %v1257_v13  }
 0xebc   :  { %v1867_v19 = vpop.permute.xlu1 %1866  ;;  %v1857_v20 = vpop.permute.xlu0 %1856 }
 0xebd   :  { %v1859_v62 = vmul.f32 %v1857_v20, %v1846_v17  ;;  %v1869_v11 = vmul.f32 %v1867_v19, %v1846_v17 }
 0xebf   :  { %1861 = vrot.lane.b32.xlu1 %v1859_v62, %s2662_s30 }
 0xec1   :  { %v1877_v44 = vpop.permute.xlu1 %1876 }
 0xec2   :  { %v1879_v61 = vmul.f32 %v1877_v44, %v1846_v17 }
 0xec3   :  { %1871 = vrot.lane.b32.xlu1 %v1869_v11, %s2663_s12 }
 0xec6   :  { %v1852_v22 = vpop.permute.xlu1 %1851 }
 0xec7   :  { %1881 = vrot.lane.b32.xlu1 %v1879_v61, %s2664_s7  ;;  %v1854_v0 = vmul.f32 %v1852_v22, %v1846_v17 }
 0xf31   :  { %v1862_v2 = vpop.permute.xlu1 %1861 }
 0xf32   :  { %v1864_v5 = vadd.f32 %v1862_v2, %v1854_v0 }
 0xf35   :  { %v1872_v3 = vpop.permute.xlu1 %1871 }
 0xf36   :  { %v1874_v45 = vadd.f32 %v1872_v3, %v1864_v5 }
 0xf39   :  { %v1882_v6 = vpop.permute.xlu1 %1881 }
 0xf3a   :  { %v1884_v7 = vadd.f32 %v1882_v6, %v1874_v45 }
 0xf3c   :  { %v1885_v8 = vmax.f32 %v1884_v7, 0.0 }
 0xf3e   :  { %2358 = vmatmul.mubr.msk.f32.vlgmr.msra.gmra.mrb[16].mxu0 %vm235_vm3, %v1885_v8 }
0x1011   :  { %v1966_v47 = vpop.f32.mrb[16].mxu0 }
0x1012   :  { %v1967_v23 = vadd.f32 %v2047_v10, %v1966_v47  ;;  %v2359_v25 = vpop.f32.mrb[17].mxu0 }
0x1014   :  { %1971 = vst.msk [vmem:[#allocation4] sm:$0x3] %vm1970_vm11, %v1967_v23 }
0x1015   :  { %2596 = shalt.err (!%p2593_p4)
}
0x1016   :  { %s2597_s22 = scalar_lea.hbm %s2839_s4, 32 }
0x1017   :  { %p2598_p5 = scmp.ne.s32.totalorder %s2839_s4, %s2597_s22  ;;  %p2601_p6 = scmp.lt.u32.totalorder %s2597_s22, %s2839_s4 }
0x1019   :  { %p2603_p7 = pnand %p2601_p6, %p2598_p5 }
0x101b   :  { %2606 = shalt.err (!%p2603_p7)
}
0x101c   :  { %1981 = dma.vmem_to_hbm [thread:$0]  %s1979_s20, 32, %s2839_s4, [#allocation5]  }
0x101d   :  { %2607 = dma.done.wait [#allocation5], 32  }
0x101e   :  { %2608 = vsyncadd [#allocation5], 4294967264 }
0x101f   :  { %1985 = vsyncpa [#allocation5], 1 }

</bundles_post_ra>
